<compile_context>
chip_gen: v7x
topology: tpu7x:2x2x1
jax: 0.10.0
libtpu: 0.0.40
codegen_flags: <defaults>
</compile_context>

<pallas_src>
import jax
import jax.numpy as jnp
from jax.experimental import pallas as pl
from jax.experimental.pallas import tpu as pltpu


def _gru_seq_kernel(tok_ref,                      # SMEM (T,)   int32  token ids (prefetched)
                    emb_ref,                      # VMEM (V, H) fp32   embedding table (resident)
                    h0_ref,                       # VMEM (1, H) fp32   initial hidden
                    wih_ref,                      # VMEM (H, 3H) bf16  W_ih^T (resident)
                    whh_ref,                      # VMEM (H, 3H) fp32  W_hh^T (resident)
                    bgi_ref,                      # VMEM (1, 3H) fp32  folded input-proj bias
                    bhn_ref,                      # VMEM (1, H)  fp32  b_hn (n-gate hidden bias)
                    out_ref,                      # VMEM (T, H)  fp32  per-step hidden states
                    x_scratch,                    # VMEM (T, H)  fp32  gathered embeddings
                    gi_scratch):                  # VMEM (T, 3H) fp32  precomputed input gates
    T, H = out_ref.shape
    V = emb_ref.shape[0]

    # --- Phase 1: gather all T embedding rows (token ids clamped: VMEM refs
    # have no runtime bounds check). Fully unrolled, T is small & static. ---
    for t in range(T):
        tok = jnp.clip(tok_ref[t], 0, V - 1)
        x_scratch[pl.ds(t, 1), :] = emb_ref[pl.ds(tok, 1), :]

    # --- Phase 2: batched input projection. One MXU matmul (T,H)@(H,3H),
    # bf16 operands, fp32 accumulate, folded (b_ih + b_hh[r,z]) bias. ---
    gi_scratch[...] = (
        jnp.dot(x_scratch[...].astype(jnp.bfloat16), wih_ref[...],
                preferred_element_type=jnp.float32)
        + bgi_ref[...])

    # --- Phase 3: sequential GRU recurrence, fully unrolled. Only the
    # h @ W_hh^T matmul and the gate math remain on the serial path. ---
    b_hn = bhn_ref[...]                           # (1, H), one vreg, hoisted
    h = h0_ref[...]                               # (1, H) fp32
    for t in range(T):
        gi = gi_scratch[pl.ds(t, 1), :]           # (1, 3H) fp32
        gh = jnp.dot(h, whh_ref[...],             # fp32 recurrent path
                     preferred_element_type=jnp.float32)
        # torch.nn.GRU gate order: reset (r), update (z), new (n)
        r = jax.nn.sigmoid(gi[:, 0:H] + gh[:, 0:H])
        z = jax.nn.sigmoid(gi[:, H:2 * H] + gh[:, H:2 * H])
        n = jnp.tanh(gi[:, 2 * H:3 * H] + r * (gh[:, 2 * H:3 * H] + b_hn))
        h = n + z * (h - n)                       # == (1-z)*n + z*h
        out_ref[pl.ds(t, 1), :] = h


def gru_encode_sequence(tokens, h0, embedding, w_ih_t, w_hh_t, b_gi, b_hn):
    """Run T GRU steps in a single pallas_call. Returns (T, H) hidden states."""
    T = tokens.shape[0]
    V, H = embedding.shape
    const2 = lambda i, tok: (0, 0)                # whole-array blocks, VMEM-resident

    grid_spec = pltpu.PrefetchScalarGridSpec(
        num_scalar_prefetch=1,                    # token ids -> SMEM before the kernel
        grid=(1,),                                # single invocation, no grid overhead
        in_specs=[
            pl.BlockSpec((V, H), const2),         # embedding table (fp32, tiny)
            pl.BlockSpec((1, H), const2),         # h0
            pl.BlockSpec((H, 3 * H), const2),     # W_ih^T (bf16)
            pl.BlockSpec((H, 3 * H), const2),     # W_hh^T (fp32)
            pl.BlockSpec((1, 3 * H), const2),     # folded input bias
            pl.BlockSpec((1, H), const2),         # b_hn
        ],
        out_specs=pl.BlockSpec((T, H), const2),   # lane-dense output slab
        scratch_shapes=[pltpu.VMEM((T, H), jnp.float32),
                        pltpu.VMEM((T, 3 * H), jnp.float32)],
    )

    return pl.pallas_call(
        _gru_seq_kernel,
        out_shape=jax.ShapeDtypeStruct((T, H), jnp.float32),
        grid_spec=grid_spec,
        compiler_params=pltpu.CompilerParams(
            dimension_semantics=("arbitrary",)),
    )(tokens, embedding, h0, w_ih_t, w_hh_t, b_gi, b_hn)


class EncoderRNNPallas:
    """JAX/Pallas port of EncoderRNN(input_size, hidden_size, 'GRU')."""

    def __init__(self, input_size, hidden_size, key):
        self.hidden_size = hidden_size
        H = hidden_size
        k_emb, k_wih, k_whh, k_bih, k_bhh = jax.random.split(key, 5)
        bound = 1.0 / jnp.sqrt(H)

        # nn.Embedding(input_size, H): weight (input_size, H), N(0,1) init.
        self.embedding = jax.random.normal(k_emb, (input_size, H), jnp.float32)

        # nn.GRU(H, H) parameters, torch layout (3H, H) / (3H,), gate order r,z,n.
        w_ih = jax.random.uniform(k_wih, (3 * H, H), jnp.float32, -bound, bound)
        w_hh = jax.random.uniform(k_whh, (3 * H, H), jnp.float32, -bound, bound)
        b_ih = jax.random.uniform(k_bih, (3 * H,), jnp.float32, -bound, bound)
        b_hh = jax.random.uniform(k_bhh, (3 * H,), jnp.float32, -bound, bound)

        # Kernel-friendly packing:
        #   W_ih^T in bf16 (token-only path), W_hh^T in fp32 (recurrent path).
        self.w_ih_t = jnp.transpose(w_ih).astype(jnp.bfloat16)     # (H, 3H)
        self.w_hh_t = jnp.transpose(w_hh)                          # (H, 3H) fp32
        # Fold b_hh into the input-projection bias for the r and z gates
        # (exact: those gates see gi + gh, so the biases simply add).  The n
        # gate needs b_hn kept separate because it sits inside r * (...).
        self.b_gi = jnp.concatenate(
            [b_ih[:2 * H] + b_hh[:2 * H], b_ih[2 * H:]]).reshape(1, 3 * H)
        self.b_hn = b_hh[2 * H:].reshape(1, H)

    def init_hidden(self):
        return jnp.zeros((1, 1, self.hidden_size), jnp.float32)

    def encode_sequence(self, tokens, hidden):
        """Encode a whole token sequence with one kernel launch.

        tokens: (T,) int32, hidden: (1,1,H). Returns (outputs (T,1,H), hidden (1,1,H)).
        """
        H = self.hidden_size
        tokens = jnp.asarray(tokens, jnp.int32).reshape(-1)
        h0 = hidden.reshape(1, H)
        hs = gru_encode_sequence(tokens, h0, self.embedding,
                                 self.w_ih_t, self.w_hh_t, self.b_gi, self.b_hn)
        outputs = hs.reshape(-1, 1, H)            # GRU outputs, seq-major
        hidden_out = hs[-1].reshape(1, 1, H)      # final hidden state
        return outputs, hidden_out

    def __call__(self, token_id, hidden):
        """Single-token forward, matching the PyTorch module semantics."""
        outputs, hidden_out = self.encode_sequence(
            jnp.asarray(token_id, jnp.int32).reshape(1), hidden)
        output = outputs.reshape(1, 1, self.hidden_size)
        return output, hidden_out


def _gru_reference_seq(tokens, h0, emb, w_ih_t, w_hh_t, b_gi, b_hn):
    """Pure-JAX step-by-step reference with identical dtype / bias-folding math."""
    H = h0.shape[-1]

    def step(h, tok):
        x = emb[tok][None, :]
        gi = jnp.dot(x.astype(jnp.bfloat16), w_ih_t,
                     preferred_element_type=jnp.float32) + b_gi
        gh = jnp.dot(h, w_hh_t, preferred_element_type=jnp.float32)
        r = jax.nn.sigmoid(gi[:, :H] + gh[:, :H])
        z = jax.nn.sigmoid(gi[:, H:2 * H] + gh[:, H:2 * H])
        n = jnp.tanh(gi[:, 2 * H:] + r * (gh[:, 2 * H:] + b_hn))
        h_new = n + z * (h - n)
        return h_new, h_new[0]

    h_last, hs = jax.lax.scan(step, h0, tokens)
    return hs, h_last                              # (T, H), (1, H)


if __name__ == "__main__":
    INPUT_SIZE = 16      # vocab size
    HIDDEN_SIZE = 128    # lane-dense hidden dim
    SEQ_LEN = 8

    key = jax.random.PRNGKey(0)
    model = EncoderRNNPallas(INPUT_SIZE, HIDDEN_SIZE, key)

    tokens = jax.random.randint(jax.random.PRNGKey(1), (SEQ_LEN,), 0, INPUT_SIZE,
                                dtype=jnp.int32)
    hidden0 = model.init_hidden()                 # (1,1,H) zeros

    # ---- full-sequence path (single pallas_call, single grid step) ----
    outputs, hidden_T = model.encode_sequence(tokens, hidden0)
    outputs = jax.block_until_ready(outputs)
    hidden_T = jax.block_until_ready(hidden_T)

    ref_hs, ref_hT = _gru_reference_seq(tokens, hidden0.reshape(1, HIDDEN_SIZE),
                                        model.embedding, model.w_ih_t, model.w_hh_t,
                                        model.b_gi, model.b_hn)
    assert outputs.shape == (SEQ_LEN, 1, HIDDEN_SIZE)
    assert hidden_T.shape == (1, 1, HIDDEN_SIZE)
    assert jnp.allclose(outputs.reshape(SEQ_LEN, HIDDEN_SIZE), ref_hs,
                        atol=2e-3, rtol=2e-3)
    assert jnp.allclose(hidden_T.reshape(1, HIDDEN_SIZE), ref_hT,
                        atol=2e-3, rtol=2e-3)

    # ---- single-token forward (original module semantics) ----
    out1, hid1 = model(tokens[0], hidden0)
    out1 = jax.block_until_ready(out1)
    assert out1.shape == (1, 1, HIDDEN_SIZE)
    assert hid1.shape == (1, 1, HIDDEN_SIZE)
    assert jnp.allclose(out1, hid1)
    assert jnp.allclose(out1.reshape(1, HIDDEN_SIZE), ref_hs[0:1],
                        atol=2e-3, rtol=2e-3)

    print("KERNEL_OK")
</pallas_src>

<mosaic_0001>
module attributes {stable_mosaic.version = 11 : i64} {
  func.func @_gru_seq_kernel(%arg0: i32, %arg1: memref<8xi32, #tpu.memory_space<smem>>, %arg2: memref<16x128xf32, #tpu.memory_space<vmem>>, %arg3: memref<1x128xf32, #tpu.memory_space<vmem>>, %arg4: memref<128x384xbf16, #tpu.memory_space<vmem>>, %arg5: memref<128x384xf32, #tpu.memory_space<vmem>>, %arg6: memref<1x384xf32, #tpu.memory_space<vmem>>, %arg7: memref<1x128xf32, #tpu.memory_space<vmem>>, %arg8: memref<8x128xf32, #tpu.memory_space<vmem>>, %arg9: memref<8x128xf32, #tpu.memory_space<vmem>>, %arg10: memref<8x384xf32, #tpu.memory_space<vmem>>) attributes {dimension_semantics = [#tpu.dimension_semantics<arbitrary>], iteration_bounds = array<i64: 1>, scalar_prefetch = 1 : i64, scratch_operands = 2 : i64, tpu.core_type = #tpu.core_type<tc>, window_params = [{pipeline_mode = #tpu.pipeline_mode<synchronous>, transform_indices = @transform_0, window_bounds = array<i64: 16, 128>}, {pipeline_mode = #tpu.pipeline_mode<synchronous>, transform_indices = @transform_1, window_bounds = array<i64: 1, 128>}, {pipeline_mode = #tpu.pipeline_mode<synchronous>, transform_indices = @transform_2, window_bounds = array<i64: 128, 384>}, {pipeline_mode = #tpu.pipeline_mode<synchronous>, transform_indices = @transform_3, window_bounds = array<i64: 128, 384>}, {pipeline_mode = #tpu.pipeline_mode<synchronous>, transform_indices = @transform_4, window_bounds = array<i64: 1, 384>}, {pipeline_mode = #tpu.pipeline_mode<synchronous>, transform_indices = @transform_5, window_bounds = array<i64: 1, 128>}, {pipeline_mode = #tpu.pipeline_mode<synchronous>, transform_indices = @transform_6, window_bounds = array<i64: 8, 128>}]} {
    %c0 = arith.constant 0 : index
    %0 = memref.load %arg1[%c0] : memref<8xi32, #tpu.memory_space<smem>>
    %c0_i32 = arith.constant 0 : i32
    %c15_i32 = arith.constant 15 : i32
    %1 = arith.maxsi %c0_i32, %0 : i32
    %2 = arith.minsi %c15_i32, %1 : i32
    %3 = arith.index_cast %2 : i32 to index
    %c0_0 = arith.constant 0 : index
    %4 = vector.load %arg2[%3, %c0_0] : memref<16x128xf32, #tpu.memory_space<vmem>>, vector<1x128xf32>
    %c0_1 = arith.constant 0 : index
    %c0_2 = arith.constant 0 : index
    %5 = vector.load %arg9[%c0_1, %c0_2] : memref<8x128xf32, #tpu.memory_space<vmem>>, vector<1x128xf32>
    tpu.vector_store %arg9[%c0_1, %c0_2], %4 {strides = array<i32>} : memref<8x128xf32, #tpu.memory_space<vmem>>, vector<1x128xf32>,
    %c1 = arith.constant 1 : index
    %6 = memref.load %arg1[%c1] : memref<8xi32, #tpu.memory_space<smem>>
    %c0_i32_3 = arith.constant 0 : i32
    %c15_i32_4 = arith.constant 15 : i32
    %7 = arith.maxsi %c0_i32_3, %6 : i32
    %8 = arith.minsi %c15_i32_4, %7 : i32
    %9 = arith.index_cast %8 : i32 to index
    %c0_5 = arith.constant 0 : index
    %10 = vector.load %arg2[%9, %c0_5] : memref<16x128xf32, #tpu.memory_space<vmem>>, vector<1x128xf32>
    %c1_6 = arith.constant 1 : index
    %c0_7 = arith.constant 0 : index
    %11 = vector.load %arg9[%c1_6, %c0_7] : memref<8x128xf32, #tpu.memory_space<vmem>>, vector<1x128xf32>
    tpu.vector_store %arg9[%c1_6, %c0_7], %10 {strides = array<i32>} : memref<8x128xf32, #tpu.memory_space<vmem>>, vector<1x128xf32>,
    %c2 = arith.constant 2 : index
    %12 = memref.load %arg1[%c2] : memref<8xi32, #tpu.memory_space<smem>>
    %c0_i32_8 = arith.constant 0 : i32
    %c15_i32_9 = arith.constant 15 : i32
    %13 = arith.maxsi %c0_i32_8, %12 : i32
    %14 = arith.minsi %c15_i32_9, %13 : i32
    %15 = arith.index_cast %14 : i32 to index
    %c0_10 = arith.constant 0 : index
    %16 = vector.load %arg2[%15, %c0_10] : memref<16x128xf32, #tpu.memory_space<vmem>>, vector<1x128xf32>
    %c2_11 = arith.constant 2 : index
    %c0_12 = arith.constant 0 : index
    %17 = vector.load %arg9[%c2_11, %c0_12] : memref<8x128xf32, #tpu.memory_space<vmem>>, vector<1x128xf32>
    tpu.vector_store %arg9[%c2_11, %c0_12], %16 {strides = array<i32>} : memref<8x128xf32, #tpu.memory_space<vmem>>, vector<1x128xf32>,
    %c3 = arith.constant 3 : index
    %18 = memref.load %arg1[%c3] : memref<8xi32, #tpu.memory_space<smem>>
    %c0_i32_13 = arith.constant 0 : i32
    %c15_i32_14 = arith.constant 15 : i32
    %19 = arith.maxsi %c0_i32_13, %18 : i32
    %20 = arith.minsi %c15_i32_14, %19 : i32
    %21 = arith.index_cast %20 : i32 to index
    %c0_15 = arith.constant 0 : index
    %22 = vector.load %arg2[%21, %c0_15] : memref<16x128xf32, #tpu.memory_space<vmem>>, vector<1x128xf32>
    %c3_16 = arith.constant 3 : index
    %c0_17 = arith.constant 0 : index
    %23 = vector.load %arg9[%c3_16, %c0_17] : memref<8x128xf32, #tpu.memory_space<vmem>>, vector<1x128xf32>
    tpu.vector_store %arg9[%c3_16, %c0_17], %22 {strides = array<i32>} : memref<8x128xf32, #tpu.memory_space<vmem>>, vector<1x128xf32>,
    %c4 = arith.constant 4 : index
    %24 = memref.load %arg1[%c4] : memref<8xi32, #tpu.memory_space<smem>>
    %c0_i32_18 = arith.constant 0 : i32
    %c15_i32_19 = arith.constant 15 : i32
    %25 = arith.maxsi %c0_i32_18, %24 : i32
    %26 = arith.minsi %c15_i32_19, %25 : i32
    %27 = arith.index_cast %26 : i32 to index
    %c0_20 = arith.constant 0 : index
    %28 = vector.load %arg2[%27, %c0_20] : memref<16x128xf32, #tpu.memory_space<vmem>>, vector<1x128xf32>
    %c4_21 = arith.constant 4 : index
    %c0_22 = arith.constant 0 : index
    %29 = vector.load %arg9[%c4_21, %c0_22] : memref<8x128xf32, #tpu.memory_space<vmem>>, vector<1x128xf32>
    tpu.vector_store %arg9[%c4_21, %c0_22], %28 {strides = array<i32>} : memref<8x128xf32, #tpu.memory_space<vmem>>, vector<1x128xf32>,
    %c5 = arith.constant 5 : index
    %30 = memref.load %arg1[%c5] : memref<8xi32, #tpu.memory_space<smem>>
    %c0_i32_23 = arith.constant 0 : i32
    %c15_i32_24 = arith.constant 15 : i32
    %31 = arith.maxsi %c0_i32_23, %30 : i32
    %32 = arith.minsi %c15_i32_24, %31 : i32
    %33 = arith.index_cast %32 : i32 to index
    %c0_25 = arith.constant 0 : index
    %34 = vector.load %arg2[%33, %c0_25] : memref<16x128xf32, #tpu.memory_space<vmem>>, vector<1x128xf32>
    %c5_26 = arith.constant 5 : index
    %c0_27 = arith.constant 0 : index
    %35 = vector.load %arg9[%c5_26, %c0_27] : memref<8x128xf32, #tpu.memory_space<vmem>>, vector<1x128xf32>
    tpu.vector_store %arg9[%c5_26, %c0_27], %34 {strides = array<i32>} : memref<8x128xf32, #tpu.memory_space<vmem>>, vector<1x128xf32>,
    %c6 = arith.constant 6 : index
    %36 = memref.load %arg1[%c6] : memref<8xi32, #tpu.memory_space<smem>>
    %c0_i32_28 = arith.constant 0 : i32
    %c15_i32_29 = arith.constant 15 : i32
    %37 = arith.maxsi %c0_i32_28, %36 : i32
    %38 = arith.minsi %c15_i32_29, %37 : i32
    %39 = arith.index_cast %38 : i32 to index
    %c0_30 = arith.constant 0 : index
    %40 = vector.load %arg2[%39, %c0_30] : memref<16x128xf32, #tpu.memory_space<vmem>>, vector<1x128xf32>
    %c6_31 = arith.constant 6 : index
    %c0_32 = arith.constant 0 : index
    %41 = vector.load %arg9[%c6_31, %c0_32] : memref<8x128xf32, #tpu.memory_space<vmem>>, vector<1x128xf32>
    tpu.vector_store %arg9[%c6_31, %c0_32], %40 {strides = array<i32>} : memref<8x128xf32, #tpu.memory_space<vmem>>, vector<1x128xf32>,
    %c7 = arith.constant 7 : index
    %42 = memref.load %arg1[%c7] : memref<8xi32, #tpu.memory_space<smem>>
    %c0_i32_33 = arith.constant 0 : i32
    %c15_i32_34 = arith.constant 15 : i32
    %43 = arith.maxsi %c0_i32_33, %42 : i32
    %44 = arith.minsi %c15_i32_34, %43 : i32
    %45 = arith.index_cast %44 : i32 to index
    %c0_35 = arith.constant 0 : index
    %46 = vector.load %arg2[%45, %c0_35] : memref<16x128xf32, #tpu.memory_space<vmem>>, vector<1x128xf32>
    %c7_36 = arith.constant 7 : index
    %c0_37 = arith.constant 0 : index
    %47 = vector.load %arg9[%c7_36, %c0_37] : memref<8x128xf32, #tpu.memory_space<vmem>>, vector<1x128xf32>
    tpu.vector_store %arg9[%c7_36, %c0_37], %46 {strides = array<i32>} : memref<8x128xf32, #tpu.memory_space<vmem>>, vector<1x128xf32>,
    %c0_38 = arith.constant 0 : index
    %c0_39 = arith.constant 0 : index
    %48 = vector.load %arg9[%c0_38, %c0_39] : memref<8x128xf32, #tpu.memory_space<vmem>>, vector<8x128xf32>
    %49 = arith.truncf %48 : vector<8x128xf32> to vector<8x128xbf16>
    %c0_40 = arith.constant 0 : index
    %c0_41 = arith.constant 0 : index
    %50 = vector.load %arg4[%c0_40, %c0_41] : memref<128x384xbf16, #tpu.memory_space<vmem>>, vector<128x384xbf16>
    %cst = arith.constant dense<0.000000e+00> : vector<8x384xf32>
    %51 = tpu.matmul %49, %50, %cst {dimension_numbers = #tpu.dot_dimension_numbers<[1], [0], [0], [1], [0, 0, 1, 1], [], []>} : vector<8x128xbf16>, vector<128x384xbf16>, vector<8x384xf32> -> vector<8x384xf32>
    %c0_42 = arith.constant 0 : index
    %c0_43 = arith.constant 0 : index
    %52 = vector.load %arg6[%c0_42, %c0_43] : memref<1x384xf32, #tpu.memory_space<vmem>>, vector<1x384xf32>
    %53 = vector.broadcast %52 : vector<1x384xf32> to vector<8x384xf32>
    %54 = arith.addf %51, %53 : vector<8x384xf32>
    %c0_44 = arith.constant 0 : index
    %c0_45 = arith.constant 0 : index
    %55 = vector.load %arg10[%c0_44, %c0_45] : memref<8x384xf32, #tpu.memory_space<vmem>>, vector<8x384xf32>
    tpu.vector_store %arg10[%c0_44, %c0_45], %54 {strides = array<i32>} : memref<8x384xf32, #tpu.memory_space<vmem>>, vector<8x384xf32>,
    %c0_46 = arith.constant 0 : index
    %c0_47 = arith.constant 0 : index
    %56 = vector.load %arg7[%c0_46, %c0_47] : memref<1x128xf32, #tpu.memory_space<vmem>>, vector<1x128xf32>
    %c0_48 = arith.constant 0 : index
    %c0_49 = arith.constant 0 : index
    %57 = vector.load %arg3[%c0_48, %c0_49] : memref<1x128xf32, #tpu.memory_space<vmem>>, vector<1x128xf32>
    %c0_50 = arith.constant 0 : index
    %c0_51 = arith.constant 0 : index
    %58 = vector.load %arg10[%c0_50, %c0_51] : memref<8x384xf32, #tpu.memory_space<vmem>>, vector<1x384xf32>
    %c0_52 = arith.constant 0 : index
    %c0_53 = arith.constant 0 : index
    %59 = vector.load %arg5[%c0_52, %c0_53] : memref<128x384xf32, #tpu.memory_space<vmem>>, vector<128x384xf32>
    %cst_54 = arith.constant dense<0.000000e+00> : vector<1x384xf32>
    %60 = tpu.matmul %57, %59, %cst_54 {dimension_numbers = #tpu.dot_dimension_numbers<[1], [0], [0], [1], [0, 0, 1, 1], [], []>} : vector<1x128xf32>, vector<128x384xf32>, vector<1x384xf32> -> vector<1x384xf32>
    %61 = vector.extract_strided_slice %58 {offsets = [0, 0], sizes = [1, 128], strides = [1, 1]} : vector<1x384xf32> to vector<1x128xf32>
    %62 = vector.extract_strided_slice %60 {offsets = [0, 0], sizes = [1, 128], strides = [1, 1]} : vector<1x384xf32> to vector<1x128xf32>
    %63 = arith.addf %61, %62 : vector<1x128xf32>
    %64 = arith.negf %63 : vector<1x128xf32>
    %65 = math.exp %64 : vector<1x128xf32>
    %cst_55 = arith.constant 1.000000e+00 : f32
    %66 = vector.broadcast %cst_55 : f32 to vector<1x128xf32>
    %67 = arith.addf %66, %65 : vector<1x128xf32>
    %68 = arith.divf %66, %67 : vector<1x128xf32>
    %69 = vector.extract_strided_slice %58 {offsets = [0, 128], sizes = [1, 128], strides = [1, 1]} : vector<1x384xf32> to vector<1x128xf32>
    %70 = vector.extract_strided_slice %60 {offsets = [0, 128], sizes = [1, 128], strides = [1, 1]} : vector<1x384xf32> to vector<1x128xf32>
    %71 = arith.addf %69, %70 : vector<1x128xf32>
    %72 = arith.negf %71 : vector<1x128xf32>
    %73 = math.exp %72 : vector<1x128xf32>
    %cst_56 = arith.constant 1.000000e+00 : f32
    %74 = vector.broadcast %cst_56 : f32 to vector<1x128xf32>
    %75 = arith.addf %74, %73 : vector<1x128xf32>
    %76 = arith.divf %74, %75 : vector<1x128xf32>
    %77 = vector.extract_strided_slice %58 {offsets = [0, 256], sizes = [1, 128], strides = [1, 1]} : vector<1x384xf32> to vector<1x128xf32>
    %78 = vector.extract_strided_slice %60 {offsets = [0, 256], sizes = [1, 128], strides = [1, 1]} : vector<1x384xf32> to vector<1x128xf32>
    %79 = arith.addf %78, %56 : vector<1x128xf32>
    %80 = arith.mulf %68, %79 : vector<1x128xf32>
    %81 = arith.addf %77, %80 : vector<1x128xf32>
    %82 = math.tanh %81 : vector<1x128xf32>
    %83 = arith.subf %57, %82 : vector<1x128xf32>
    %84 = arith.mulf %76, %83 : vector<1x128xf32>
    %85 = arith.addf %82, %84 : vector<1x128xf32>
    %c0_57 = arith.constant 0 : index
    %c0_58 = arith.constant 0 : index
    %86 = vector.load %arg8[%c0_57, %c0_58] : memref<8x128xf32, #tpu.memory_space<vmem>>, vector<1x128xf32>
    tpu.vector_store %arg8[%c0_57, %c0_58], %85 {strides = array<i32>} : memref<8x128xf32, #tpu.memory_space<vmem>>, vector<1x128xf32>,
    %c1_59 = arith.constant 1 : index
    %c0_60 = arith.constant 0 : index
    %87 = vector.load %arg10[%c1_59, %c0_60] : memref<8x384xf32, #tpu.memory_space<vmem>>, vector<1x384xf32>
    %c0_61 = arith.constant 0 : index
    %c0_62 = arith.constant 0 : index
    %88 = vector.load %arg5[%c0_61, %c0_62] : memref<128x384xf32, #tpu.memory_space<vmem>>, vector<128x384xf32>
    %cst_63 = arith.constant dense<0.000000e+00> : vector<1x384xf32>
    %89 = tpu.matmul %85, %88, %cst_63 {dimension_numbers = #tpu.dot_dimension_numbers<[1], [0], [0], [1], [0, 0, 1, 1], [], []>} : vector<1x128xf32>, vector<128x384xf32>, vector<1x384xf32> -> vector<1x384xf32>
    %90 = vector.extract_strided_slice %87 {offsets = [0, 0], sizes = [1, 128], strides = [1, 1]} : vector<1x384xf32> to vector<1x128xf32>
    %91 = vector.extract_strided_slice %89 {offsets = [0, 0], sizes = [1, 128], strides = [1, 1]} : vector<1x384xf32> to vector<1x128xf32>
    %92 = arith.addf %90, %91 : vector<1x128xf32>
    %93 = arith.negf %92 : vector<1x128xf32>
    %94 = math.exp %93 : vector<1x128xf32>
    %cst_64 = arith.constant 1.000000e+00 : f32
    %95 = vector.broadcast %cst_64 : f32 to vector<1x128xf32>
    %96 = arith.addf %95, %94 : vector<1x128xf32>
    %97 = arith.divf %95, %96 : vector<1x128xf32>
    %98 = vector.extract_strided_slice %87 {offsets = [0, 128], sizes = [1, 128], strides = [1, 1]} : vector<1x384xf32> to vector<1x128xf32>
    %99 = vector.extract_strided_slice %89 {offsets = [0, 128], sizes = [1, 128], strides = [1, 1]} : vector<1x384xf32> to vector<1x128xf32>
    %100 = arith.addf %98, %99 : vector<1x128xf32>
    %101 = arith.negf %100 : vector<1x128xf32>
    %102 = math.exp %101 : vector<1x128xf32>
    %cst_65 = arith.constant 1.000000e+00 : f32
    %103 = vector.broadcast %cst_65 : f32 to vector<1x128xf32>
    %104 = arith.addf %103, %102 : vector<1x128xf32>
    %105 = arith.divf %103, %104 : vector<1x128xf32>
    %106 = vector.extract_strided_slice %87 {offsets = [0, 256], sizes = [1, 128], strides = [1, 1]} : vector<1x384xf32> to vector<1x128xf32>
    %107 = vector.extract_strided_slice %89 {offsets = [0, 256], sizes = [1, 128], strides = [1, 1]} : vector<1x384xf32> to vector<1x128xf32>
    %108 = arith.addf %107, %56 : vector<1x128xf32>
    %109 = arith.mulf %97, %108 : vector<1x128xf32>
    %110 = arith.addf %106, %109 : vector<1x128xf32>
    %111 = math.tanh %110 : vector<1x128xf32>
    %112 = arith.subf %85, %111 : vector<1x128xf32>
    %113 = arith.mulf %105, %112 : vector<1x128xf32>
    %114 = arith.addf %111, %113 : vector<1x128xf32>
    %c1_66 = arith.constant 1 : index
    %c0_67 = arith.constant 0 : index
    %115 = vector.load %arg8[%c1_66, %c0_67] : memref<8x128xf32, #tpu.memory_space<vmem>>, vector<1x128xf32>
    tpu.vector_store %arg8[%c1_66, %c0_67], %114 {strides = array<i32>} : memref<8x128xf32, #tpu.memory_space<vmem>>, vector<1x128xf32>,
    %c2_68 = arith.constant 2 : index
    %c0_69 = arith.constant 0 : index
    %116 = vector.load %arg10[%c2_68, %c0_69] : memref<8x384xf32, #tpu.memory_space<vmem>>, vector<1x384xf32>
    %c0_70 = arith.constant 0 : index
    %c0_71 = arith.constant 0 : index
    %117 = vector.load %arg5[%c0_70, %c0_71] : memref<128x384xf32, #tpu.memory_space<vmem>>, vector<128x384xf32>
    %cst_72 = arith.constant dense<0.000000e+00> : vector<1x384xf32>
    %118 = tpu.matmul %114, %117, %cst_72 {dimension_numbers = #tpu.dot_dimension_numbers<[1], [0], [0], [1], [0, 0, 1, 1], [], []>} : vector<1x128xf32>, vector<128x384xf32>, vector<1x384xf32> -> vector<1x384xf32>
    %119 = vector.extract_strided_slice %116 {offsets = [0, 0], sizes = [1, 128], strides = [1, 1]} : vector<1x384xf32> to vector<1x128xf32>
    %120 = vector.extract_strided_slice %118 {offsets = [0, 0], sizes = [1, 128], strides = [1, 1]} : vector<1x384xf32> to vector<1x128xf32>
    %121 = arith.addf %119, %120 : vector<1x128xf32>
    %122 = arith.negf %121 : vector<1x128xf32>
    %123 = math.exp %122 : vector<1x128xf32>
    %cst_73 = arith.constant 1.000000e+00 : f32
    %124 = vector.broadcast %cst_73 : f32 to vector<1x128xf32>
    %125 = arith.addf %124, %123 : vector<1x128xf32>
    %126 = arith.divf %124, %125 : vector<1x128xf32>
    %127 = vector.extract_strided_slice %116 {offsets = [0, 128], sizes = [1, 128], strides = [1, 1]} : vector<1x384xf32> to vector<1x128xf32>
    %128 = vector.extract_strided_slice %118 {offsets = [0, 128], sizes = [1, 128], strides = [1, 1]} : vector<1x384xf32> to vector<1x128xf32>
    %129 = arith.addf %127, %128 : vector<1x128xf32>
    %130 = arith.negf %129 : vector<1x128xf32>
    %131 = math.exp %130 : vector<1x128xf32>
    %cst_74 = arith.constant 1.000000e+00 : f32
    %132 = vector.broadcast %cst_74 : f32 to vector<1x128xf32>
    %133 = arith.addf %132, %131 : vector<1x128xf32>
    %134 = arith.divf %132, %133 : vector<1x128xf32>
    %135 = vector.extract_strided_slice %116 {offsets = [0, 256], sizes = [1, 128], strides = [1, 1]} : vector<1x384xf32> to vector<1x128xf32>
    %136 = vector.extract_strided_slice %118 {offsets = [0, 256], sizes = [1, 128], strides = [1, 1]} : vector<1x384xf32> to vector<1x128xf32>
    %137 = arith.addf %136, %56 : vector<1x128xf32>
    %138 = arith.mulf %126, %137 : vector<1x128xf32>
    %139 = arith.addf %135, %138 : vector<1x128xf32>
    %140 = math.tanh %139 : vector<1x128xf32>
    %141 = arith.subf %114, %140 : vector<1x128xf32>
    %142 = arith.mulf %134, %141 : vector<1x128xf32>
    %143 = arith.addf %140, %142 : vector<1x128xf32>
    %c2_75 = arith.constant 2 : index
    %c0_76 = arith.constant 0 : index
    %144 = vector.load %arg8[%c2_75, %c0_76] : memref<8x128xf32, #tpu.memory_space<vmem>>, vector<1x128xf32>
    tpu.vector_store %arg8[%c2_75, %c0_76], %143 {strides = array<i32>} : memref<8x128xf32, #tpu.memory_space<vmem>>, vector<1x128xf32>,
    %c3_77 = arith.constant 3 : index
    %c0_78 = arith.constant 0 : index
    %145 = vector.load %arg10[%c3_77, %c0_78] : memref<8x384xf32, #tpu.memory_space<vmem>>, vector<1x384xf32>
    %c0_79 = arith.constant 0 : index
    %c0_80 = arith.constant 0 : index
    %146 = vector.load %arg5[%c0_79, %c0_80] : memref<128x384xf32, #tpu.memory_space<vmem>>, vector<128x384xf32>
    %cst_81 = arith.constant dense<0.000000e+00> : vector<1x384xf32>
    %147 = tpu.matmul %143, %146, %cst_81 {dimension_numbers = #tpu.dot_dimension_numbers<[1], [0], [0], [1], [0, 0, 1, 1], [], []>} : vector<1x128xf32>, vector<128x384xf32>, vector<1x384xf32> -> vector<1x384xf32>
    %148 = vector.extract_strided_slice %145 {offsets = [0, 0], sizes = [1, 128], strides = [1, 1]} : vector<1x384xf32> to vector<1x128xf32>
    %149 = vector.extract_strided_slice %147 {offsets = [0, 0], sizes = [1, 128], strides = [1, 1]} : vector<1x384xf32> to vector<1x128xf32>
    %150 = arith.addf %148, %149 : vector<1x128xf32>
    %151 = arith.negf %150 : vector<1x128xf32>
    %152 = math.exp %151 : vector<1x128xf32>
    %cst_82 = arith.constant 1.000000e+00 : f32
    %153 = vector.broadcast %cst_82 : f32 to vector<1x128xf32>
    %154 = arith.addf %153, %152 : vector<1x128xf32>
    %155 = arith.divf %153, %154 : vector<1x128xf32>
    %156 = vector.extract_strided_slice %145 {offsets = [0, 128], sizes = [1, 128], strides = [1, 1]} : vector<1x384xf32> to vector<1x128xf32>
    %157 = vector.extract_strided_slice %147 {offsets = [0, 128], sizes = [1, 128], strides = [1, 1]} : vector<1x384xf32> to vector<1x128xf32>
    %158 = arith.addf %156, %157 : vector<1x128xf32>
    %159 = arith.negf %158 : vector<1x128xf32>
    %160 = math.exp %159 : vector<1x128xf32>
    %cst_83 = arith.constant 1.000000e+00 : f32
    %161 = vector.broadcast %cst_83 : f32 to vector<1x128xf32>
    %162 = arith.addf %161, %160 : vector<1x128xf32>
    %163 = arith.divf %161, %162 : vector<1x128xf32>
    %164 = vector.extract_strided_slice %145 {offsets = [0, 256], sizes = [1, 128], strides = [1, 1]} : vector<1x384xf32> to vector<1x128xf32>
    %165 = vector.extract_strided_slice %147 {offsets = [0, 256], sizes = [1, 128], strides = [1, 1]} : vector<1x384xf32> to vector<1x128xf32>
    %166 = arith.addf %165, %56 : vector<1x128xf32>
    %167 = arith.mulf %155, %166 : vector<1x128xf32>
    %168 = arith.addf %164, %167 : vector<1x128xf32>
    %169 = math.tanh %168 : vector<1x128xf32>
    %170 = arith.subf %143, %169 : vector<1x128xf32>
    %171 = arith.mulf %163, %170 : vector<1x128xf32>
    %172 = arith.addf %169, %171 : vector<1x128xf32>
    %c3_84 = arith.constant 3 : index
    %c0_85 = arith.constant 0 : index
    %173 = vector.load %arg8[%c3_84, %c0_85] : memref<8x128xf32, #tpu.memory_space<vmem>>, vector<1x128xf32>
    tpu.vector_store %arg8[%c3_84, %c0_85], %172 {strides = array<i32>} : memref<8x128xf32, #tpu.memory_space<vmem>>, vector<1x128xf32>,
    %c4_86 = arith.constant 4 : index
    %c0_87 = arith.constant 0 : index
    %174 = vector.load %arg10[%c4_86, %c0_87] : memref<8x384xf32, #tpu.memory_space<vmem>>, vector<1x384xf32>
    %c0_88 = arith.constant 0 : index
    %c0_89 = arith.constant 0 : index
    %175 = vector.load %arg5[%c0_88, %c0_89] : memref<128x384xf32, #tpu.memory_space<vmem>>, vector<128x384xf32>
    %cst_90 = arith.constant dense<0.000000e+00> : vector<1x384xf32>
    %176 = tpu.matmul %172, %175, %cst_90 {dimension_numbers = #tpu.dot_dimension_numbers<[1], [0], [0], [1], [0, 0, 1, 1], [], []>} : vector<1x128xf32>, vector<128x384xf32>, vector<1x384xf32> -> vector<1x384xf32>
    %177 = vector.extract_strided_slice %174 {offsets = [0, 0], sizes = [1, 128], strides = [1, 1]} : vector<1x384xf32> to vector<1x128xf32>
    %178 = vector.extract_strided_slice %176 {offsets = [0, 0], sizes = [1, 128], strides = [1, 1]} : vector<1x384xf32> to vector<1x128xf32>
    %179 = arith.addf %177, %178 : vector<1x128xf32>
    %180 = arith.negf %179 : vector<1x128xf32>
    %181 = math.exp %180 : vector<1x128xf32>
    %cst_91 = arith.constant 1.000000e+00 : f32
    %182 = vector.broadcast %cst_91 : f32 to vector<1x128xf32>
    %183 = arith.addf %182, %181 : vector<1x128xf32>
    %184 = arith.divf %182, %183 : vector<1x128xf32>
    %185 = vector.extract_strided_slice %174 {offsets = [0, 128], sizes = [1, 128], strides = [1, 1]} : vector<1x384xf32> to vector<1x128xf32>
    %186 = vector.extract_strided_slice %176 {offsets = [0, 128], sizes = [1, 128], strides = [1, 1]} : vector<1x384xf32> to vector<1x128xf32>
    %187 = arith.addf %185, %186 : vector<1x128xf32>
    %188 = arith.negf %187 : vector<1x128xf32>
    %189 = math.exp %188 : vector<1x128xf32>
    %cst_92 = arith.constant 1.000000e+00 : f32
    %190 = vector.broadcast %cst_92 : f32 to vector<1x128xf32>
    %191 = arith.addf %190, %189 : vector<1x128xf32>
    %192 = arith.divf %190, %191 : vector<1x128xf32>
    %193 = vector.extract_strided_slice %174 {offsets = [0, 256], sizes = [1, 128], strides = [1, 1]} : vector<1x384xf32> to vector<1x128xf32>
    %194 = vector.extract_strided_slice %176 {offsets = [0, 256], sizes = [1, 128], strides = [1, 1]} : vector<1x384xf32> to vector<1x128xf32>
    %195 = arith.addf %194, %56 : vector<1x128xf32>
    %196 = arith.mulf %184, %195 : vector<1x128xf32>
    %197 = arith.addf %193, %196 : vector<1x128xf32>
    %198 = math.tanh %197 : vector<1x128xf32>
    %199 = arith.subf %172, %198 : vector<1x128xf32>
    %200 = arith.mulf %192, %199 : vector<1x128xf32>
    %201 = arith.addf %198, %200 : vector<1x128xf32>
    %c4_93 = arith.constant 4 : index
    %c0_94 = arith.constant 0 : index
    %202 = vector.load %arg8[%c4_93, %c0_94] : memref<8x128xf32, #tpu.memory_space<vmem>>, vector<1x128xf32>
    tpu.vector_store %arg8[%c4_93, %c0_94], %201 {strides = array<i32>} : memref<8x128xf32, #tpu.memory_space<vmem>>, vector<1x128xf32>,
    %c5_95 = arith.constant 5 : index
    %c0_96 = arith.constant 0 : index
    %203 = vector.load %arg10[%c5_95, %c0_96] : memref<8x384xf32, #tpu.memory_space<vmem>>, vector<1x384xf32>
    %c0_97 = arith.constant 0 : index
    %c0_98 = arith.constant 0 : index
    %204 = vector.load %arg5[%c0_97, %c0_98] : memref<128x384xf32, #tpu.memory_space<vmem>>, vector<128x384xf32>
    %cst_99 = arith.constant dense<0.000000e+00> : vector<1x384xf32>
    %205 = tpu.matmul %201, %204, %cst_99 {dimension_numbers = #tpu.dot_dimension_numbers<[1], [0], [0], [1], [0, 0, 1, 1], [], []>} : vector<1x128xf32>, vector<128x384xf32>, vector<1x384xf32> -> vector<1x384xf32>
    %206 = vector.extract_strided_slice %203 {offsets = [0, 0], sizes = [1, 128], strides = [1, 1]} : vector<1x384xf32> to vector<1x128xf32>
    %207 = vector.extract_strided_slice %205 {offsets = [0, 0], sizes = [1, 128], strides = [1, 1]} : vector<1x384xf32> to vector<1x128xf32>
    %208 = arith.addf %206, %207 : vector<1x128xf32>
    %209 = arith.negf %208 : vector<1x128xf32>
    %210 = math.exp %209 : vector<1x128xf32>
    %cst_100 = arith.constant 1.000000e+00 : f32
    %211 = vector.broadcast %cst_100 : f32 to vector<1x128xf32>
    %212 = arith.addf %211, %210 : vector<1x128xf32>
    %213 = arith.divf %211, %212 : vector<1x128xf32>
    %214 = vector.extract_strided_slice %203 {offsets = [0, 128], sizes = [1, 128], strides = [1, 1]} : vector<1x384xf32> to vector<1x128xf32>
    %215 = vector.extract_strided_slice %205 {offsets = [0, 128], sizes = [1, 128], strides = [1, 1]} : vector<1x384xf32> to vector<1x128xf32>
    %216 = arith.addf %214, %215 : vector<1x128xf32>
    %217 = arith.negf %216 : vector<1x128xf32>
    %218 = math.exp %217 : vector<1x128xf32>
    %cst_101 = arith.constant 1.000000e+00 : f32
    %219 = vector.broadcast %cst_101 : f32 to vector<1x128xf32>
    %220 = arith.addf %219, %218 : vector<1x128xf32>
    %221 = arith.divf %219, %220 : vector<1x128xf32>
    %222 = vector.extract_strided_slice %203 {offsets = [0, 256], sizes = [1, 128], strides = [1, 1]} : vector<1x384xf32> to vector<1x128xf32>
    %223 = vector.extract_strided_slice %205 {offsets = [0, 256], sizes = [1, 128], strides = [1, 1]} : vector<1x384xf32> to vector<1x128xf32>
    %224 = arith.addf %223, %56 : vector<1x128xf32>
    %225 = arith.mulf %213, %224 : vector<1x128xf32>
    %226 = arith.addf %222, %225 : vector<1x128xf32>
    %227 = math.tanh %226 : vector<1x128xf32>
    %228 = arith.subf %201, %227 : vector<1x128xf32>
    %229 = arith.mulf %221, %228 : vector<1x128xf32>
    %230 = arith.addf %227, %229 : vector<1x128xf32>
    %c5_102 = arith.constant 5 : index
    %c0_103 = arith.constant 0 : index
    %231 = vector.load %arg8[%c5_102, %c0_103] : memref<8x128xf32, #tpu.memory_space<vmem>>, vector<1x128xf32>
    tpu.vector_store %arg8[%c5_102, %c0_103], %230 {strides = array<i32>} : memref<8x128xf32, #tpu.memory_space<vmem>>, vector<1x128xf32>,
    %c6_104 = arith.constant 6 : index
    %c0_105 = arith.constant 0 : index
    %232 = vector.load %arg10[%c6_104, %c0_105] : memref<8x384xf32, #tpu.memory_space<vmem>>, vector<1x384xf32>
    %c0_106 = arith.constant 0 : index
    %c0_107 = arith.constant 0 : index
    %233 = vector.load %arg5[%c0_106, %c0_107] : memref<128x384xf32, #tpu.memory_space<vmem>>, vector<128x384xf32>
    %cst_108 = arith.constant dense<0.000000e+00> : vector<1x384xf32>
    %234 = tpu.matmul %230, %233, %cst_108 {dimension_numbers = #tpu.dot_dimension_numbers<[1], [0], [0], [1], [0, 0, 1, 1], [], []>} : vector<1x128xf32>, vector<128x384xf32>, vector<1x384xf32> -> vector<1x384xf32>
    %235 = vector.extract_strided_slice %232 {offsets = [0, 0], sizes = [1, 128], strides = [1, 1]} : vector<1x384xf32> to vector<1x128xf32>
    %236 = vector.extract_strided_slice %234 {offsets = [0, 0], sizes = [1, 128], strides = [1, 1]} : vector<1x384xf32> to vector<1x128xf32>
    %237 = arith.addf %235, %236 : vector<1x128xf32>
    %238 = arith.negf %237 : vector<1x128xf32>
    %239 = math.exp %238 : vector<1x128xf32>
    %cst_109 = arith.constant 1.000000e+00 : f32
    %240 = vector.broadcast %cst_109 : f32 to vector<1x128xf32>
    %241 = arith.addf %240, %239 : vector<1x128xf32>
    %242 = arith.divf %240, %241 : vector<1x128xf32>
    %243 = vector.extract_strided_slice %232 {offsets = [0, 128], sizes = [1, 128], strides = [1, 1]} : vector<1x384xf32> to vector<1x128xf32>
    %244 = vector.extract_strided_slice %234 {offsets = [0, 128], sizes = [1, 128], strides = [1, 1]} : vector<1x384xf32> to vector<1x128xf32>
    %245 = arith.addf %243, %244 : vector<1x128xf32>
    %246 = arith.negf %245 : vector<1x128xf32>
    %247 = math.exp %246 : vector<1x128xf32>
    %cst_110 = arith.constant 1.000000e+00 : f32
    %248 = vector.broadcast %cst_110 : f32 to vector<1x128xf32>
    %249 = arith.addf %248, %247 : vector<1x128xf32>
    %250 = arith.divf %248, %249 : vector<1x128xf32>
    %251 = vector.extract_strided_slice %232 {offsets = [0, 256], sizes = [1, 128], strides = [1, 1]} : vector<1x384xf32> to vector<1x128xf32>
    %252 = vector.extract_strided_slice %234 {offsets = [0, 256], sizes = [1, 128], strides = [1, 1]} : vector<1x384xf32> to vector<1x128xf32>
    %253 = arith.addf %252, %56 : vector<1x128xf32>
    %254 = arith.mulf %242, %253 : vector<1x128xf32>
    %255 = arith.addf %251, %254 : vector<1x128xf32>
    %256 = math.tanh %255 : vector<1x128xf32>
    %257 = arith.subf %230, %256 : vector<1x128xf32>
    %258 = arith.mulf %250, %257 : vector<1x128xf32>
    %259 = arith.addf %256, %258 : vector<1x128xf32>
    %c6_111 = arith.constant 6 : index
    %c0_112 = arith.constant 0 : index
    %260 = vector.load %arg8[%c6_111, %c0_112] : memref<8x128xf32, #tpu.memory_space<vmem>>, vector<1x128xf32>
    tpu.vector_store %arg8[%c6_111, %c0_112], %259 {strides = array<i32>} : memref<8x128xf32, #tpu.memory_space<vmem>>, vector<1x128xf32>,
    %c7_113 = arith.constant 7 : index
    %c0_114 = arith.constant 0 : index
    %261 = vector.load %arg10[%c7_113, %c0_114] : memref<8x384xf32, #tpu.memory_space<vmem>>, vector<1x384xf32>
    %c0_115 = arith.constant 0 : index
    %c0_116 = arith.constant 0 : index
    %262 = vector.load %arg5[%c0_115, %c0_116] : memref<128x384xf32, #tpu.memory_space<vmem>>, vector<128x384xf32>
    %cst_117 = arith.constant dense<0.000000e+00> : vector<1x384xf32>
    %263 = tpu.matmul %259, %262, %cst_117 {dimension_numbers = #tpu.dot_dimension_numbers<[1], [0], [0], [1], [0, 0, 1, 1], [], []>} : vector<1x128xf32>, vector<128x384xf32>, vector<1x384xf32> -> vector<1x384xf32>
    %264 = vector.extract_strided_slice %261 {offsets = [0, 0], sizes = [1, 128], strides = [1, 1]} : vector<1x384xf32> to vector<1x128xf32>
    %265 = vector.extract_strided_slice %263 {offsets = [0, 0], sizes = [1, 128], strides = [1, 1]} : vector<1x384xf32> to vector<1x128xf32>
    %266 = arith.addf %264, %265 : vector<1x128xf32>
    %267 = arith.negf %266 : vector<1x128xf32>
    %268 = math.exp %267 : vector<1x128xf32>
    %cst_118 = arith.constant 1.000000e+00 : f32
    %269 = vector.broadcast %cst_118 : f32 to vector<1x128xf32>
    %270 = arith.addf %269, %268 : vector<1x128xf32>
    %271 = arith.divf %269, %270 : vector<1x128xf32>
    %272 = vector.extract_strided_slice %261 {offsets = [0, 128], sizes = [1, 128], strides = [1, 1]} : vector<1x384xf32> to vector<1x128xf32>
    %273 = vector.extract_strided_slice %263 {offsets = [0, 128], sizes = [1, 128], strides = [1, 1]} : vector<1x384xf32> to vector<1x128xf32>
    %274 = arith.addf %272, %273 : vector<1x128xf32>
    %275 = arith.negf %274 : vector<1x128xf32>
    %276 = math.exp %275 : vector<1x128xf32>
    %cst_119 = arith.constant 1.000000e+00 : f32
    %277 = vector.broadcast %cst_119 : f32 to vector<1x128xf32>
    %278 = arith.addf %277, %276 : vector<1x128xf32>
    %279 = arith.divf %277, %278 : vector<1x128xf32>
    %280 = vector.extract_strided_slice %261 {offsets = [0, 256], sizes = [1, 128], strides = [1, 1]} : vector<1x384xf32> to vector<1x128xf32>
    %281 = vector.extract_strided_slice %263 {offsets = [0, 256], sizes = [1, 128], strides = [1, 1]} : vector<1x384xf32> to vector<1x128xf32>
    %282 = arith.addf %281, %56 : vector<1x128xf32>
    %283 = arith.mulf %271, %282 : vector<1x128xf32>
    %284 = arith.addf %280, %283 : vector<1x128xf32>
    %285 = math.tanh %284 : vector<1x128xf32>
    %286 = arith.subf %259, %285 : vector<1x128xf32>
    %287 = arith.mulf %279, %286 : vector<1x128xf32>
    %288 = arith.addf %285, %287 : vector<1x128xf32>
    %c7_120 = arith.constant 7 : index
    %c0_121 = arith.constant 0 : index
    %289 = vector.load %arg8[%c7_120, %c0_121] : memref<8x128xf32, #tpu.memory_space<vmem>>, vector<1x128xf32>
    tpu.vector_store %arg8[%c7_120, %c0_121], %288 {strides = array<i32>} : memref<8x128xf32, #tpu.memory_space<vmem>>, vector<1x128xf32>,
    return
  }
  func.func @transform_0(%arg0: i32, %arg1: memref<8xi32, #tpu.memory_space<smem>>) -> (i32, i32) {
    %c0_i32 = arith.constant 0 : i32
    %c0_i32_0 = arith.constant 0 : i32
    %c0_i32_1 = arith.constant 0 : i32
    return %c0_i32, %c0_i32_0 : i32, i32
  }
  func.func @transform_1(%arg0: i32, %arg1: memref<8xi32, #tpu.memory_space<smem>>) -> (i32, i32) {
    %c0_i32 = arith.constant 0 : i32
    %c0_i32_0 = arith.constant 0 : i32
    %c0_i32_1 = arith.constant 0 : i32
    return %c0_i32, %c0_i32_0 : i32, i32
  }
  func.func @transform_2(%arg0: i32, %arg1: memref<8xi32, #tpu.memory_space<smem>>) -> (i32, i32) {
    %c0_i32 = arith.constant 0 : i32
    %c0_i32_0 = arith.constant 0 : i32
    %c0_i32_1 = arith.constant 0 : i32
    return %c0_i32, %c0_i32_0 : i32, i32
  }
  func.func @transform_3(%arg0: i32, %arg1: memref<8xi32, #tpu.memory_space<smem>>) -> (i32, i32) {
    %c0_i32 = arith.constant 0 : i32
    %c0_i32_0 = arith.constant 0 : i32
    %c0_i32_1 = arith.constant 0 : i32
    return %c0_i32, %c0_i32_0 : i32, i32
  }
  func.func @transform_4(%arg0: i32, %arg1: memref<8xi32, #tpu.memory_space<smem>>) -> (i32, i32) {
    %c0_i32 = arith.constant 0 : i32
    %c0_i32_0 = arith.constant 0 : i32
    %c0_i32_1 = arith.constant 0 : i32
    return %c0_i32, %c0_i32_0 : i32, i32
  }
  func.func @transform_5(%arg0: i32, %arg1: memref<8xi32, #tpu.memory_space<smem>>) -> (i32, i32) {
    %c0_i32 = arith.constant 0 : i32
    %c0_i32_0 = arith.constant 0 : i32
    %c0_i32_1 = arith.constant 0 : i32
    return %c0_i32, %c0_i32_0 : i32, i32
  }
  func.func @transform_6(%arg0: i32, %arg1: memref<8xi32, #tpu.memory_space<smem>>) -> (i32, i32) {
    %c0_i32 = arith.constant 0 : i32
    %c0_i32_0 = arith.constant 0 : i32
    %c0_i32_1 = arith.constant 0 : i32
    return %c0_i32, %c0_i32_0 : i32, i32
  }
}

</mosaic_0001>

<bundles_post_ra>
// kernel: tpu_custom_call.1
= control target key start
LH: loop header
LB: loop body
LE: loop exit
PB: predicated region body
PF: predicated region fallthrough
CT: control target
= control target key end

     0   :  { %s4003_s0 = inlined_call_operand.hbm [shape: s32[8], index: 0, kind: input, shape index: {}]   ;;  %s4004_s1 = inlined_call_operand.hbm [shape: f32[16,128], index: 1, kind: input, shape index: {}]   ;;  %s4005_s2 = inlined_call_operand.vmem [shape: f32[1,128], index: 2, kind: input, shape index: {}]   ;;  %s4006_s3 = inlined_call_operand.hbm [shape: bf16[128,384], index: 3, kind: input, shape index: {}]   ;;  %s4007_s4 = inlined_call_operand.hbm [shape: f32[128,384], index: 4, kind: input, shape index: {}]   ;;  %s4008_s5 = inlined_call_operand.vmem [shape: f32[1,384], index: 5, kind: input, shape index: {}]   ;;  %s4009_s6 = inlined_call_operand.vmem [shape: f32[1,128], index: 6, kind: input, shape index: {}]   ;;  %s4010_s7 = inlined_call_operand.hbm [shape: f32[8,128], index: 7, kind: output, shape index: {}]  }
   0x1   :  { %s3290_s26 = scalar_lea.hbm %s4003_s0, 16 }
   0x2   :  { %p3291_p0 = scmp.ne.s32.totalorder %s4003_s0, %s3290_s26  ;;  %p3294_p1 = scmp.lt.u32.totalorder %s3290_s26, %s4003_s0 }
   0x4   :  { %p3296_p2 = pnand %p3294_p1, %p3291_p0 }
   0x6   :  { %3299 = shalt.err (!%p3296_p2)  }
   0x7   :  { %s3396_s8 = smov [#allocation5]  }
   0x8   :  { %13 = dma.hbm_to_smem %s4003_s0, 16, %s3396_s8, [#allocation4] }
   0x9   :  { %3388 = dma.done.wait [#allocation4], 16 }
   0xa   :  { %3389 = vsyncadd [#allocation4], 4294967280 }
   0xb   :  { %15 = sfence }
   0xc   :  { %16 = vsyncpa [#allocation7], 0 }
   0xd   :  { %17 = vsyncpa [#allocation10], 0 }
   0xe   :  { %18 = vsyncpa [#allocation8], 0  ;;  %s3397_s11 = smov [#allocation9]   ;;  %s3300_s15 = scalar_lea.hbm %s4006_s3, 3072 }
   0xf   :  { %s38_s12 = sshll.u32 %s3397_s11, 4  ;;  %p3301_p3 = scmp.ne.s32.totalorder %s4006_s3, %s3300_s15  ;;  %s39_s12 = int_to_ptr.vmem [resolvable:$true] %s38_s12 }
  0x10   :  { %p3304_p4 = scmp.lt.u32.totalorder %s3300_s15, %s4006_s3 }
  0x12   :  { %p3306_p5 = pnand %p3304_p4, %p3301_p3 }
  0x14   :  { %3309 = shalt.err (!%p3306_p5)
}
  0x15   :  { %s3310_s0 = scalar_lea.vmem %s39_s12, 3072  ;;  %p3315_p7 = scmp.lt.s32.totalorder %s39_s12, %s39_s12 }
  0x16   :  { %p3311_p6 = scmp.ne.s32.totalorder %s39_s12, %s3310_s0  ;;  %p3316_p8 = scmp.lt.s32.totalorder %s3310_s0, %s3310_s0 }
  0x18   :  { %p3317_p9 = por %p3316_p8, %p3315_p7 }
  0x1a   :  { %p3318_p10 = pnand %p3317_p9, %p3311_p6 }
  0x1c   :  { %3321 = shalt.err (!%p3318_p10)
}
  0x1d   :  { %s3398_s20 = smov 192   ;;  %s3399_s21 = smov 12  }
  0x1e   :  { %44 = dma.hbm_to_vmem [thread:$0]  %s4006_s3, 3072, %s39_s12, [#allocation10], %s3398_s20, %s3398_s20, %s3399_s21  }
  0x1f   :  { %s3400_s24 = smov [#allocation6]   ;;  %s3322_s28 = scalar_lea.hbm %s4004_s1, 256 }
  0x20   :  { %s24_s25 = sshll.u32 %s3400_s24, 4  ;;  %p3323_p11 = scmp.ne.s32.totalorder %s4004_s1, %s3322_s28  ;;  %s25_s25 = int_to_ptr.vmem [resolvable:$true] %s24_s25 }
  0x21   :  { %p3326_p12 = scmp.lt.u32.totalorder %s3322_s28, %s4004_s1 }
  0x23   :  { %p3328_p13 = pnand %p3326_p12, %p3323_p11 }
  0x25   :  { %3331 = shalt.err (!%p3328_p13)
}
  0x26   :  { %s3332_s10 = scalar_lea.vmem %s25_s25, 256  ;;  %p3337_p1 = scmp.lt.s32.totalorder %s25_s25, %s25_s25 }
  0x27   :  { %p3333_p0 = scmp.ne.s32.totalorder %s25_s25, %s3332_s10  ;;  %p3338_p2 = scmp.lt.s32.totalorder %s3332_s10, %s3332_s10 }
  0x29   :  { %p3339_p3 = por %p3338_p2, %p3337_p1 }
  0x2b   :  { %p3340_p4 = pnand %p3339_p3, %p3333_p0 }
  0x2d   :  { %3343 = shalt.err (!%p3340_p4)
}
  0x2e   :  { %s3401_s3 = smov 128   ;;  %s3402_s11 = smov 8  }
  0x2f   :  { %30 = dma.hbm_to_vmem [thread:$0]  %s4004_s1, 256, %s25_s25, [#allocation7], %s3401_s3, %s3401_s3, %s3402_s11  }
  0x30   :  { %s3403_s14 = smov [#allocation11]   ;;  %s3344_s18 = scalar_lea.hbm %s4007_s4, 6144 }
  0x31   :  { %s50_s15 = sshll.u32 %s3403_s14, 4  ;;  %p3345_p5 = scmp.ne.s32.totalorder %s4007_s4, %s3344_s18  ;;  %s51_s15 = int_to_ptr.vmem [resolvable:$true] %s50_s15 }
  0x32   :  { %p3348_p6 = scmp.lt.u32.totalorder %s3344_s18, %s4007_s4 }
  0x34   :  { %p3350_p7 = pnand %p3348_p6, %p3345_p5 }
  0x36   :  { %3353 = shalt.err (!%p3350_p7)
}
  0x37   :  { %s3354_s22 = scalar_lea.vmem %s51_s15, 6144  ;;  %p3359_p9 = scmp.lt.s32.totalorder %s51_s15, %s51_s15 }
  0x38   :  { %p3355_p8 = scmp.ne.s32.totalorder %s51_s15, %s3354_s22  ;;  %p3360_p10 = scmp.lt.s32.totalorder %s3354_s22, %s3354_s22 }
  0x3a   :  { %p3361_p11 = por %p3360_p10, %p3359_p9 }
  0x3c   :  { %p3362_p12 = pnand %p3361_p11, %p3355_p8 }
  0x3e   :  { %3365 = shalt.err (!%p3362_p12)
}
  0x3f   :  { %s3404_s1 = smov 384   ;;  %s3405_s23 = smov 24  }
  0x40   :  { %56 = dma.hbm_to_vmem [thread:$0]  %s4007_s4, 6144, %s51_s15, [#allocation10], %s3404_s1, %s3404_s1, %s3405_s23  }
  0x41   :  { %3390 = dma.done.wait [#allocation7], 256  }
  0x42   :  { %3391 = vsyncadd [#allocation7], 4294967040 }
  0x43   :  { %3392 = dma.done.wait [#allocation10], 9216  }
  0x44   :  { %3393 = vsyncadd [#allocation10], 4294958080  ;;  %v3406_v0 = vmov 0.0   ;;  %v3407_v1 = vmov 0   ;;  %s3500_s26 = sld [smem:[#allocation5]]  ;;  %vm3408_vm0 = vmmov 0  }
  0x45   :  { %2415 = vmatprep.subr.bf16.mxu1 %v3406_v0  ;;  %346 = vmatprep.mubr.bf16.mxu0 %v3407_v1  ;;  %s3504_s27 = sld [smem:[#allocation5 + $0x1]]  ;;  %s3506_s4 = sld [smem:[#allocation5 + $0x2]]  ;;  %v3178_v2 = vld [vmem:[#allocation9 + $0x4] ss:$12 sps:$4 sm:$0xff]   ;;  %v3180_v3 = vld [vmem:[#allocation9] ss:$12 sps:$4 sm:$0xff]  }
  0x46   :  { %2431 = vmatprep.mubr.msk.bf16.mxu1 %vm3408_vm0, %v3406_v0  ;;  %s3508_s28 = sld [smem:[#allocation5 + $0x3]]  ;;  %314 = vmatprep.subr.bf16.mxu0 %v3178_v2  ;;  %v3181_v4 = vld [vmem:[#allocation9 + $0x8] ss:$12 sps:$4 sm:$0xff]   ;;  %s3511_s29 = sld [smem:[#allocation5 + $0x4]]  ;;  %v3184_v6 = vld [vmem:[#allocation9 + $0x18] ss:$12 sps:$4 sm:$0xff]  }
  0x47   :  { %315 = vmatpush1.bf16.msra.mxu0 %v3180_v3  ;;  %v3182_v5 = vld [vmem:[#allocation9 + $0x1c] ss:$12 sps:$4 sm:$0xff]   ;;  %2416 = vmatpush3.bf16.msra.mxu1 %v3181_v4  ;;  %v3185_v7 = vld [vmem:[#allocation9 + $0x20] ss:$12 sps:$4 sm:$0xff]   ;;  %v3189_v10 = vld [vmem:[#allocation9 + $0x38] ss:$12 sps:$4 sm:$0xff]  }
  0x48   :  { %316 = vmatprep.subr.bf16.mxu0 %v3182_v5  ;;  %2417 = vmatprep.subr.bf16.mxu1 %v3406_v0  ;;  %v3186_v8 = vld [vmem:[#allocation9 + $0x34] ss:$12 sps:$4 sm:$0xff]   ;;  %v3188_v9 = vld [vmem:[#allocation9 + $0x30] ss:$12 sps:$4 sm:$0xff]   ;;  %v3190_v11 = vld [vmem:[#allocation9 + $0x4c] ss:$12 sps:$4 sm:$0xff]  }
  0x49   :  { %v3192_v12 = vld [vmem:[#allocation9 + $0x48] ss:$12 sps:$4 sm:$0xff]   ;;  %v3193_v13 = vld [vmem:[#allocation9 + $0x50] ss:$12 sps:$4 sm:$0xff]   ;;  %v3196_v15 = vld [vmem:[#allocation9 + $0x60] ss:$12 sps:$4 sm:$0xff]  }
  0x4a   :  { %p72_p13 = scmp.gt.s32.totalorder %s3500_s26, 0  ;;  %p2167_p0 = scmp.lt.s32.totalorder %s3500_s26, 15  ;;  %v3194_v14 = vld [vmem:[#allocation9 + $0x64] ss:$12 sps:$4 sm:$0xff]   ;;  %v3197_v16 = vld [vmem:[#allocation9 + $0x68] ss:$12 sps:$4 sm:$0xff]  }
  0x4b   :  { %p80_p1 = scmp.gt.s32.totalorder %s3504_s27, 0  ;;  %317 = vmatpush1.bf16.msra.mxu0 %v3184_v6  ;;  %p2173_p2 = scmp.lt.s32.totalorder %s3504_s27, 15  ;;  %2418 = vmatpush3.bf16.msra.mxu1 %v3185_v7  ;;  %v3198_v17 = vld [vmem:[#allocation9 + $0x7c] ss:$12 sps:$4 sm:$0xff]   ;;  %v3200_v19 = vld [vmem:[#allocation9 + $0x78] ss:$12 sps:$4 sm:$0xff]  }
  0x4c   :  { %s73_s30 = scalar_select %p72_p13, %s3500_s26, 0  ;;  %318 = vmatprep.subr.bf16.mxu0 %v3186_v8  ;;  %2419 = vmatprep.subr.bf16.mxu1 %v3406_v0  ;;  %v3201_v21 = vld [vmem:[#allocation9 + $0x80] ss:$12 sps:$4 sm:$0xff]   ;;  %v3204_v24 = vld [vmem:[#allocation9 + $0x90] ss:$12 sps:$4 sm:$0xff]   ;;  %v3409_v35 = vmov 0.0|0.0  }
  0x4d   :  { %s4012_s27 = smov (!%p80_p1, %s3504_s27), 0  ;;  %p88_p3 = scmp.gt.s32.totalorder %s3506_s4, 0  ;;  %v3202_v22 = vld [vmem:[#allocation9 + $0x94] ss:$12 sps:$4 sm:$0xff]   ;;  %v3205_v25 = vld [vmem:[#allocation9 + $0x98] ss:$12 sps:$4 sm:$0xff]  }
  0x4e   :  { %s4014_s30 = smov (!%p2167_p0, %s73_s30), 15  ;;  %s4016_s27 = smov (!%p2173_p2, %s4012_s27), 15  ;;  %v3206_v26 = vld [vmem:[#allocation9 + $0xac] ss:$12 sps:$4 sm:$0xff]   ;;  %v405_v28 = vld [vmem:[#allocation11 + $0x20] sm:$0xff]  ;;  %v403_v40 = vld [vmem:[#allocation11 + $0x10] sm:$0xff] }
  0x4f   :  { %319 = vmatpush1.bf16.msra.mxu0 %v3188_v9  ;;  %2420 = vmatpush3.bf16.msra.mxu1 %v3189_v10  ;;  %p2179_p4 = scmp.lt.s32.totalorder %s3506_s4, 15  ;;  %s3525_s9 = sld [smem:[#allocation5 + $0x5]]  ;;  %v402_v27 = vld [vmem:[#allocation11 + $0x8] sm:$0xff]  ;;  %v3209_v31 = vld [vmem:[#allocation9 + $0xb0] ss:$12 sps:$4 sm:$0xff]   ;;  %v401_v38 = vld [vmem:[#allocation11] sm:$0xff] }
  0x50   :  { %320 = vmatprep.subr.bf16.mxu0 %v3190_v11  ;;  %2421 = vmatprep.subr.bf16.mxu1 %v3406_v0  ;;  %s89_s8 = scalar_select %p88_p3, %s3506_s4, 0  ;;  %v3208_v29 = vld [vmem:[#allocation9 + $0xa8] ss:$12 sps:$4 sm:$0xff]   ;;  %v3546_v32 = vpack.c.bf16 %v405_v28, %v402_v27  ;;  %v404_v39 = vld [vmem:[#allocation11 + $0x18] sm:$0xff]  ;;  %v409_v51 = vld [vmem:[#allocation11 + $0x40] sm:$0xff] }
  0x51   :  { %s3527_s10 = sld [smem:[#allocation5 + $0x6]]  ;;  %s76_s3 = scalar_lea.vmem [#allocation6], %s4014_s30  ;;  %v406_v41 = vld [vmem:[#allocation11 + $0x28] sm:$0xff]  ;;  %v408_v42 = vld [vmem:[#allocation11 + $0x38] sm:$0xff]  ;;  %v411_v43 = vld [vmem:[#allocation11 + $0x50] sm:$0xff]  ;;  %v3559_v45 = vpack.c.bf16 %v404_v39, %v401_v38 }
  0x52   :  { %v77_v18 = vld [vmem:[%s76_s3] sm:$0x1]  ;;  %s3529_s11 = sld [smem:[#allocation5 + $0x7]]  ;;  %s84_s12 = scalar_lea.vmem [#allocation6], %s4016_s27  ;;  %v407_v46 = vld [vmem:[#allocation11 + $0x30] sm:$0xff]  ;;  %v3561_v47 = vpack.c.bf16 %v406_v41, %v403_v40  ;;  %v3563_v49 = vpack.c.bf16 %v411_v43, %v408_v42  ;;  %v412_v52 = vld [vmem:[#allocation11 + $0x58] sm:$0xff] }
  0x53   :  { %321 = vmatpush1.bf16.msra.mxu0 %v3192_v12  ;;  %2422 = vmatpush3.bf16.msra.mxu1 %v3193_v13  ;;  %78 = vst [vmem:[#allocation2] sm:$0x1] %v77_v18  ;;  %v85_v20 = vld [vmem:[%s84_s12] sm:$0x1]  ;;  %s4018_s8 = smov (!%p2179_p4, %s89_s8), 15  ;;  %p96_p5 = scmp.gt.s32.totalorder %s3508_s28, 0  ;;  %v3569_v57 = vpack.c.bf16 %v412_v52, %v409_v51  ;;  %v171_v52 = vlaneseq }
  0x54   :  { %322 = vmatprep.subr.bf16.mxu0 %v3194_v14  ;;  %2423 = vmatprep.subr.bf16.mxu1 %v3406_v0  ;;  %86 = vst [vmem:[#allocation2 + $0x1] sm:$0x1] %v85_v20  ;;  %p2185_p6 = scmp.lt.s32.totalorder %s3508_s28, 15  ;;  %p104_p7 = scmp.gt.s32.totalorder %s3511_s29, 0  ;;  %v410_v50 = vld [vmem:[#allocation11 + $0x48] sm:$0xff]  ;;  %v417_v54 = vld [vmem:[#allocation11 + $0x80] sm:$0xff] }
  0x55   :  { %s92_s13 = scalar_lea.vmem [#allocation6], %s4018_s8  ;;  %p2191_p8 = scmp.lt.s32.totalorder %s3511_s29, 15  ;;  %v414_v53 = vld [vmem:[#allocation11 + $0x68] sm:$0xff]  ;;  %v3566_v55 = vpack.c.bf16 %v410_v50, %v407_v46  ;;  %v413_v56 = vld [vmem:[#allocation11 + $0x60] sm:$0xff]  ;;  %v416_v59 = vld [vmem:[#allocation11 + $0x78] sm:$0xff] }
  0x56   :  { %v93_v23 = vld [vmem:[%s92_s13] sm:$0x1]  ;;  %s97_s14 = scalar_select %p96_p5, %s3508_s28, 0  ;;  %v3572_v58 = vpack.c.bf16 %v417_v54, %v414_v53  ;;  %v415_v60 = vld [vmem:[#allocation11 + $0x70] sm:$0xff]  ;;  %v420_v62 = vld [vmem:[#allocation11 + $0x98] sm:$0xff]  ;;  %v3579_v1 = vpack.c.bf16 %v416_v59, %v413_v56  ;;  %v172_v53 = vshrl.u32 %v171_v52, 7 }
  0x57   :  { %323 = vmatpush1.bf16.msra.mxu0 %v3196_v15  ;;  %2424 = vmatpush3.bf16.msra.mxu1 %v3197_v16  ;;  %94 = vst [vmem:[#allocation2 + $0x2] sm:$0x1] %v93_v23  ;;  %s105_s15 = scalar_select %p104_p7, %s3511_s29, 0  ;;  %v418_v61 = vld [vmem:[#allocation11 + $0x88] sm:$0xff]  ;;  %v423_v63 = vld [vmem:[#allocation11 + $0xb0] sm:$0xff]  ;;  %v421_v6 = vld [vmem:[#allocation11 + $0xa0] sm:$0xff] }
  0x58   :  { %324 = vmatprep.subr.bf16.mxu0 %v3198_v17  ;;  %2425 = vmatprep.subr.bf16.mxu1 %v3406_v0  ;;  %s4020_s14 = smov (!%p2185_p6, %s97_s14), 15  ;;  %p112_p9 = scmp.gt.s32.totalorder %s3525_s9, 0  ;;  %v419_v2 = vld [vmem:[#allocation11 + $0x90] sm:$0xff]  ;;  %v3582_v3 = vpack.c.bf16 %v418_v61, %v415_v60  ;;  %v3585_v4 = vpack.c.bf16 %v423_v63, %v420_v62  ;;  %v422_v5 = vld [vmem:[#allocation11 + $0xa8] sm:$0xff]  ;;  %v424_v7 = vld [vmem:[#allocation11 + $0xb8] sm:$0xff]  ;;  %v173_v54 = vsub.s32 0, %v172_v53 }
  0x59   :  { %p2197_p10 = scmp.lt.s32.totalorder %s3525_s9, 15  ;;  %s100_s16 = scalar_lea.vmem [#allocation6], %s4020_s14  ;;  %v426_v8 = vld [vmem:[#allocation11 + $0xc8] sm:$0xff]  ;;  %v429_v9 = vld [vmem:[#allocation11 + $0xe0] sm:$0xff]  ;;  %v3589_v10 = vpack.c.bf16 %v422_v5, %v419_v2  ;;  %v3592_v12 = vpack.c.bf16 %v424_v7, %v421_v6  ;;  %v428_v14 = vld [vmem:[#allocation11 + $0xd8] sm:$0xff]  ;;  %v181_v56 = vsub.s32 2, %v172_v53 }
  0x5a   :  { %v101_v30 = vld [vmem:[%s100_s16] sm:$0x1]  ;;  %s4022_s15 = smov (!%p2191_p8, %s105_s15), 15  ;;  %p120_p11 = scmp.gt.s32.totalorder %s3527_s10, 0  ;;  %v425_v11 = vld [vmem:[#allocation11 + $0xc0] sm:$0xff]  ;;  %v3595_v13 = vpack.c.bf16 %v429_v9, %v426_v8  ;;  %v427_v15 = vld [vmem:[#allocation11 + $0xd0] sm:$0xff] }
  0x5b   :  { %325 = vmatpush1.bf16.msra.mxu0 %v3200_v19  ;;  %2426 = vmatpush3.bf16.msra.mxu1 %v3201_v21  ;;  %102 = vst [vmem:[#allocation2 + $0x3] sm:$0x1] %v101_v30  ;;  %s113_s17 = scalar_select %p112_p9, %s3525_s9, 0  ;;  %v430_v16 = vld [vmem:[#allocation11 + $0xe8] sm:$0xff]  ;;  %v432_v17 = vld [vmem:[#allocation11 + $0xf8] sm:$0xff]  ;;  %v435_v18 = vld [vmem:[#allocation11 + $0x110] sm:$0xff]  ;;  %v3599_v19 = vpack.c.bf16 %v428_v14, %v425_v11 }
  0x5c   :  { %326 = vmatprep.subr.bf16.mxu0 %v3202_v22  ;;  %2427 = vmatprep.subr.bf16.mxu1 %v3406_v0  ;;  %s108_s18 = scalar_lea.vmem [#allocation6], %s4022_s15  ;;  %p2203_p12 = scmp.lt.s32.totalorder %s3527_s10, 15  ;;  %v431_v20 = vld [vmem:[#allocation11 + $0xf0] sm:$0xff]  ;;  %v3602_v21 = vpack.c.bf16 %v430_v16, %v427_v15  ;;  %v3605_v22 = vpack.c.bf16 %v435_v18, %v432_v17  ;;  %v434_v23 = vld [vmem:[#allocation11 + $0x108] sm:$0xff]  ;;  %v441_v27 = vld [vmem:[#allocation11 + $0x140] sm:$0xff]  ;;  %v177_v60 = vsub.s32 1, %v172_v53 }
  0x5d   :  { %v109_v33 = vld [vmem:[%s108_s18] sm:$0x1]  ;;  %s4024_s17 = smov (!%p2197_p10, %s113_s17), 15  ;;  %p128_p13 = scmp.gt.s32.totalorder %s3529_s11, 0  ;;  %v3609_v28 = vpack.c.bf16 %v434_v23, %v431_v20  ;;  %v447_v38 = vld [vmem:[#allocation11 + $0x170] sm:$0xff]  ;;  %v448_v46 = vld [vmem:[#allocation11 + $0x178] sm:$0xff] }
  0x5e   :  { %110 = vst [vmem:[#allocation2 + $0x4] sm:$0x1] %v109_v33  ;;  %s121_s19 = scalar_select %p120_p11, %s3527_s10, 0  ;;  %v440_v33 = vld [vmem:[#allocation11 + $0x138] sm:$0xff]  ;;  %v443_v40 = vld [vmem:[#allocation11 + $0x150] sm:$0xff]  ;;  %v446_v43 = vld [vmem:[#allocation11 + $0x168] sm:$0xff] }
  0x5f   :  { %327 = vmatpush1.bf16.msra.mxu0 %v3204_v24  ;;  %2428 = vmatpush3.bf16.msra.mxu1 %v3205_v25  ;;  %s116_s0 = scalar_lea.vmem [#allocation6], %s4024_s17  ;;  %p2209_p0 = scmp.lt.s32.totalorder %s3529_s11, 15  ;;  %v433_v24 = vld [vmem:[#allocation11 + $0x100] sm:$0xff]  ;;  %v436_v25 = vld [vmem:[#allocation11 + $0x118] sm:$0xff]  ;;  %v3640_v51 = vld [vmem:[%s4005_s2] sm:$0x1] }
  0x60   :  { %328 = vmatprep.subr.bf16.mxu0 %v3206_v26  ;;  %2429 = vmatprep.subr.bf16.mxu1 %v3406_v0  ;;  %v117_v34 = vld [vmem:[%s116_s0] sm:$0x1]  ;;  %s4026_s19 = smov (!%p2203_p12, %s121_s19), 15  ;;  %s4028_s11 = smov (!%p128_p13, %s3529_s11), 0  ;;  %v3612_v30 = vpack.c.bf16 %v436_v25, %v433_v24 }
  0x61   :  { %118 = vst [vmem:[#allocation2 + $0x5] sm:$0x1] %v117_v34  ;;  %s124_s20 = scalar_lea.vmem [#allocation6], %s4026_s19  ;;  %s4030_s11 = smov (!%p2209_p0, %s4028_s11), 15  ;;  %v438_v26 = vld [vmem:[#allocation11 + $0x128] sm:$0xff]  ;;  %v439_v34 = vld [vmem:[#allocation11 + $0x130] sm:$0xff] }
  0x62   :  { %v125_v36 = vld [vmem:[%s124_s20] sm:$0x1]  ;;  %s132_s21 = scalar_lea.vmem [#allocation6], %s4030_s11 }
  0x63   :  { %329 = vmatpush1.bf16.msra.mxu0 %v3208_v29  ;;  %2430 = vmatpush3.bf16.msra.mxu1 %v3209_v31  ;;  %126 = vst [vmem:[#allocation2 + $0x6] sm:$0x1] %v125_v36  ;;  %v133_v37 = vld [vmem:[%s132_s21] sm:$0x1]  ;;  %v437_v29 = vld [vmem:[#allocation11 + $0x120] sm:$0xff]  ;;  %v3615_v31 = vpack.c.bf16 %v441_v27, %v438_v26 }
  0x64   :  { %2716 = vmatprep.subr.bf16.mxu0 %v3546_v32  ;;  %2747 = vmatprep.subr.bf16.mxu1 %v3409_v35  ;;  %134 = vst [vmem:[#allocation2 + $0x7] sm:$0x1] %v133_v37  ;;  %v442_v36 = vld [vmem:[#allocation11 + $0x148] sm:$0xff]  ;;  %v444_v37 = vld [vmem:[#allocation11 + $0x158] sm:$0xff]  ;;  %v3619_v39 = vpack.c.bf16 %v440_v33, %v437_v29 }
  0x65   :  { %v3622_v41 = vpack.c.bf16 %v442_v36, %v439_v34  ;;  %v3625_v42 = vpack.c.bf16 %v447_v38, %v444_v37  ;;  %v169_v59 = vld [vmem:[%s4008_s5] sm:$0x7] }
  0x66   :  { %v174_v61 = vrot.slane %v169_v59, %v173_v54  ;;  %v182_v62 = vrot.slane %v169_v59, %v181_v56  ;;  %v178_v63 = vrot.slane %v169_v59, %v177_v60  ;;  %v3688_v38 = vld [vmem:[%s4009_s6] sm:$0x1]  ;;  %s3410_s6 = smov [#allocation12]  }
  0x67   :  { %s2149_s25 = sshll.u32 %s3410_s6, 4  ;;  %s2150_s25 = int_to_ptr.vmem [resolvable:$true] %s2149_s25 }
  0x68   :  { %s3366_s26 = scalar_lea.vmem %s2150_s25, 128  ;;  %p3371_p2 = scmp.lt.s32.totalorder %s2150_s25, %s2150_s25 }
  0x69   :  { %p3367_p1 = scmp.ne.s32.totalorder %s2150_s25, %s3366_s26  ;;  %p3372_p3 = scmp.lt.s32.totalorder %s3366_s26, %s3366_s26 }
  0x6b   :  { %v135_v44 = vld [vmem:[#allocation2] sm:$0xff]  ;;  %p3373_p4 = por %p3372_p3, %p3371_p2 }
  0x6c   :  { %v136_v48 = vpack.c.bf16 %v135_v44, %v135_v44  ;;  %v445_v44 = vld [vmem:[#allocation11 + $0x160] sm:$0xff] }
  0x6d   :  { %v3632_v50 = vpack.c.bf16 %v448_v46, %v445_v44  ;;  %p3374_p5 = pnand %p3373_p4, %p3367_p1 }
  0x6e   :  { %347 = vmatmul.mubr.bf16.vlgmr.msra.gmra.mrb[0].mxu0 %v136_v48  ;;  %2432 = vmatmul.mubr.bf16.vlgmr.msra.gmra.mrb[0].mxu1 %v136_v48  ;;  %v3629_v48 = vpack.c.bf16 %v446_v43, %v443_v40 }
  0x6f   :  { %2718 = vmatpush1.bf16.msra.mxu0 %v3559_v45  ;;  %2749 = vmatpush3.bf16.msra.mxu1 %v3561_v47 }
  0x70   :  { %2720 = vmatprep.subr.bf16.mxu0 %v3563_v49  ;;  %2750 = vmatprep.subr.bf16.mxu1 %v3409_v35 }
  0x71   :  { %513 = vmatprep.mubr.f32.mxu0 %v3406_v0  ;;  %2467 = vmatprep.mubr.msk.f32.mxu1 %vm3408_vm0, %v3406_v0 }
  0x73   :  { %2722 = vmatpush1.bf16.msra.mxu0 %v3566_v55  ;;  %2752 = vmatpush3.bf16.msra.mxu1 %v3569_v57 }
  0x74   :  { %2724 = vmatprep.subr.bf16.mxu0 %v3572_v58  ;;  %2753 = vmatprep.subr.bf16.mxu1 %v3409_v35 }
  0x77   :  { %2726 = vmatpush1.bf16.msra.mxu0 %v3579_v1  ;;  %2755 = vmatpush3.bf16.msra.mxu1 %v3582_v3 }
  0x78   :  { %2728 = vmatprep.subr.bf16.mxu0 %v3585_v4  ;;  %2756 = vmatprep.subr.bf16.mxu1 %v3409_v35 }
  0x7b   :  { %2730 = vmatpush1.bf16.msra.mxu0 %v3589_v10  ;;  %2758 = vmatpush3.bf16.msra.mxu1 %v3592_v12 }
  0x7c   :  { %2732 = vmatprep.subr.bf16.mxu0 %v3595_v13  ;;  %2759 = vmatprep.subr.bf16.mxu1 %v3409_v35 }
  0x7f   :  { %2734 = vmatpush1.bf16.msra.mxu0 %v3599_v19  ;;  %2761 = vmatpush3.bf16.msra.mxu1 %v3602_v21 }
  0x80   :  { %2736 = vmatprep.subr.bf16.mxu0 %v3605_v22  ;;  %2762 = vmatprep.subr.bf16.mxu1 %v3409_v35 }
  0x83   :  { %2738 = vmatpush1.bf16.msra.mxu0 %v3609_v28  ;;  %2764 = vmatpush3.bf16.msra.mxu1 %v3612_v30 }
  0x84   :  { %2740 = vmatprep.subr.bf16.mxu0 %v3615_v31  ;;  %2765 = vmatprep.subr.bf16.mxu1 %v3409_v35 }
  0x87   :  { %2742 = vmatpush1.bf16.msra.mxu0 %v3619_v39  ;;  %2767 = vmatpush3.bf16.msra.mxu1 %v3622_v41 }
  0x88   :  { %2744 = vmatprep.subr.bf16.mxu0 %v3625_v42  ;;  %2768 = vmatprep.subr.bf16.mxu1 %v3409_v35 }
  0x8b   :  { %2746 = vmatpush1.bf16.msra.mxu0 %v3629_v48  ;;  %2770 = vmatpush3.bf16.msra.mxu1 %v3632_v50 }
  0x8c   :  { %2772 = vmatprep.subr.bf16.mxu0 %v3546_v32  ;;  %2803 = vmatprep.subr.bf16.mxu1 %v3409_v35 }
  0x8e   :  { %514 = vmatmul.mubr.f32.vlgmr.msra.gmra.mrb[4].mxu0 %v3640_v51  ;;  %2468 = vmatmul.mubr.f32.vlgmr.msra.gmra.mrb[4].mxu1 %v3640_v51 }
  0x8f   :  { %2774 = vmatpush1.bf16.msra.mxu0 %v3559_v45  ;;  %2805 = vmatpush3.bf16.msra.mxu1 %v3561_v47 }
  0x90   :  { %2776 = vmatprep.subr.bf16.mxu0 %v3563_v49  ;;  %2806 = vmatprep.subr.bf16.mxu1 %v3409_v35 }
  0x91   :  { %731 = vmatprep.mubr.f32.mxu0 %v3406_v0  ;;  %2502 = vmatprep.mubr.msk.f32.mxu1 %vm3408_vm0, %v3406_v0 }
  0x93   :  { %2778 = vmatpush1.bf16.msra.mxu0 %v3566_v55  ;;  %2808 = vmatpush3.bf16.msra.mxu1 %v3569_v57 }
  0x94   :  { %2780 = vmatprep.subr.bf16.mxu0 %v3572_v58  ;;  %2809 = vmatprep.subr.bf16.mxu1 %v3409_v35 }
  0x97   :  { %2782 = vmatpush1.bf16.msra.mxu0 %v3579_v1  ;;  %2811 = vmatpush3.bf16.msra.mxu1 %v3582_v3 }
  0x98   :  { %2784 = vmatprep.subr.bf16.mxu0 %v3585_v4  ;;  %2812 = vmatprep.subr.bf16.mxu1 %v3409_v35 }
  0x9b   :  { %2786 = vmatpush1.bf16.msra.mxu0 %v3589_v10  ;;  %2814 = vmatpush3.bf16.msra.mxu1 %v3592_v12 }
  0x9c   :  { %2788 = vmatprep.subr.bf16.mxu0 %v3595_v13  ;;  %2815 = vmatprep.subr.bf16.mxu1 %v3409_v35 }
  0x9f   :  { %2790 = vmatpush1.bf16.msra.mxu0 %v3599_v19  ;;  %2817 = vmatpush3.bf16.msra.mxu1 %v3602_v21 }
  0xa0   :  { %2792 = vmatprep.subr.bf16.mxu0 %v3605_v22  ;;  %2818 = vmatprep.subr.bf16.mxu1 %v3409_v35 }
  0xa3   :  { %2794 = vmatpush1.bf16.msra.mxu0 %v3609_v28  ;;  %2820 = vmatpush3.bf16.msra.mxu1 %v3612_v30 }
  0xa4   :  { %2796 = vmatprep.subr.bf16.mxu0 %v3615_v31  ;;  %2821 = vmatprep.subr.bf16.mxu1 %v3409_v35 }
  0xa7   :  { %2798 = vmatpush1.bf16.msra.mxu0 %v3619_v39  ;;  %2823 = vmatpush3.bf16.msra.mxu1 %v3622_v41 }
  0xa8   :  { %2800 = vmatprep.subr.bf16.mxu0 %v3625_v42  ;;  %2824 = vmatprep.subr.bf16.mxu1 %v3409_v35 }
  0xab   :  { %2802 = vmatpush1.bf16.msra.mxu0 %v3629_v48  ;;  %2826 = vmatpush3.bf16.msra.mxu1 %v3632_v50 }
  0xac   :  { %2828 = vmatprep.subr.bf16.mxu0 %v3546_v32  ;;  %2859 = vmatprep.subr.bf16.mxu1 %v3409_v35 }
 0x141   :  { %v348_v2 = vpop.f32.mrb[0].mxu0  ;;  %v389_v5 = vpop.f32.mrb[0].mxu1 }
 0x142   :  { %v349_v6 = vadd.f32 %v348_v2, %v174_v61  ;;  %v350_v7 = vpop.f32.mrb[1].mxu0  ;;  %v390_v8 = vadd.f32 %v389_v5, %v182_v62  ;;  %v2433_v9 = vpop.f32.mrb[1].mxu1 }
 0x143   :  { %v351_v11 = vadd.f32 %v350_v7, %v178_v63  ;;  %v352_v14 = vpop.f32.mrb[2].mxu0  ;;  %v392_v15 = vpop.f32.mrb[2].mxu1 }
 0x144   :  { %395 = vst [vmem:[#allocation3] sm:$0xff] %v349_v6  ;;  %397 = vst [vmem:[#allocation3 + $0x10] sm:$0xff] %v390_v8  ;;  %v353_v16 = vpop.f32.mrb[3].mxu0  ;;  %v2434_v17 = vpop.f32.mrb[3].mxu1 }
 0x145   :  { %396 = vst [vmem:[#allocation3 + $0x8] sm:$0xff] %v351_v11 }
 0x14c   :  { %v400_v18 = vld [vmem:[#allocation3] ss:$8 sm:$0x7] }
 0x14d   :  { %v598_v29 = vrot.slane %v400_v18, 1  ;;  %v609_v46 = vrot.slane %v400_v18, 2 }
 0x161   :  { %v515_v20 = vpop.f32.mrb[4].mxu0  ;;  %v586_v23 = vpop.f32.mrb[4].mxu1 }
 0x162   :  { %v590_v24 = vadd.f32 %v515_v20, %v400_v18  ;;  %v517_v25 = vpop.f32.mrb[5].mxu0  ;;  %v2469_v26 = vpop.f32.mrb[5].mxu1  ;;  %v607_v40 = vadd.f32 %v586_v23, %v3688_v38 }
 0x163   :  { %v600_v33 = vadd.f32 %v598_v29, %v517_v25 }
 0x164   :  { %v2238_v27 = vmul.f32 -1.442695, %v590_v24 }
 0x165   :  { %v2239_v34 = vmul.f32 -1.442695, %v600_v33 }
 0x166   :  { %3210 = vpow2.f32 %v2238_v27 }
 0x167   :  { %3212 = vpow2.f32 %v2239_v34 }
 0x170   :  { %v3211_v36 = vpop.eup %3210 }
 0x171   :  { %v594_v37 = vadd.f32 1.0, %v3211_v36  ;;  %v3213_v43 = vpop.eup %3212 }
 0x172   :  { %v604_v53 = vadd.f32 1.0, %v3213_v43 }
 0x173   :  { %3214 = vrcp.f32 %v594_v37 }
 0x17d   :  { %v3215_v44 = vpop.eup %3214 }
 0x17e   :  { %v608_v52 = vmul.f32 %v3215_v44, %v607_v40  ;;  %v1274_v44 = vld [vmem:[#allocation11 + $0x8] sm:$0xff] }
 0x180   :  { %v611_v54 = vadd.f32 %v609_v46, %v608_v52  ;;  %v1277_v46 = vld [vmem:[#allocation11 + $0x20] sm:$0xff] }
 0x181   :  { %v3789_v52 = vpack.c.bf16 %v1277_v46, %v1274_v44  ;;  %v1320_v44 = vld [vmem:[#allocation11 + $0x178] sm:$0xff] }
 0x182   :  { %3216 = vtanh.f32 %v611_v54 }
 0x183   :  { %3218 = vrcp.f32 %v604_v53  ;;  %v1276_v53 = vld [vmem:[#allocation11 + $0x18] sm:$0xff] }
 0x18c   :  { %v3217_v56 = vpop.eup %3216 }
 0x18d   :  { %v613_v59 = vsub.f32 %v3640_v51, %v3217_v56  ;;  %v3219_v60 = vpop.eup %3218  ;;  %v618_v51 = vld [vmem:[#allocation3 + $0x1] ss:$8 sm:$0x7] }
 0x18e   :  { %v816_v9 = vrot.slane %v618_v51, 1  ;;  %v827_v20 = vrot.slane %v618_v51, 2 }
 0x18f   :  { %v614_v61 = vmul.f32 %v3219_v60, %v613_v59  ;;  %v1279_v60 = vld [vmem:[#allocation11 + $0x30] sm:$0xff] }
 0x191   :  { %v3692_v62 = vadd.f32 %v3217_v56, %v614_v61  ;;  %v1280_v56 = vld [vmem:[#allocation11 + $0x38] sm:$0xff] }
 0x193   :  { %616 = vst [vmem:[#allocation12] sm:$0x1] %v3692_v62  ;;  %732 = vmatmul.mubr.f32.vlgmr.msra.gmra.mrb[6].mxu0 %v3692_v62  ;;  %2503 = vmatmul.mubr.f32.vlgmr.msra.gmra.mrb[6].mxu1 %v3692_v62 }
 0x194   :  { %2830 = vmatpush1.bf16.msra.mxu0 %v3559_v45  ;;  %2861 = vmatpush3.bf16.msra.mxu1 %v3561_v47 }
 0x195   :  { %2832 = vmatprep.subr.bf16.mxu0 %v3563_v49  ;;  %2862 = vmatprep.subr.bf16.mxu1 %v3409_v35 }
 0x196   :  { %949 = vmatprep.mubr.f32.mxu0 %v3406_v0  ;;  %2537 = vmatprep.mubr.msk.f32.mxu1 %vm3408_vm0, %v3406_v0 }
 0x198   :  { %2834 = vmatpush1.bf16.msra.mxu0 %v3566_v55  ;;  %2864 = vmatpush3.bf16.msra.mxu1 %v3569_v57 }
 0x199   :  { %2836 = vmatprep.subr.bf16.mxu0 %v3572_v58  ;;  %2865 = vmatprep.subr.bf16.mxu1 %v3409_v35 }
 0x19c   :  { %2838 = vmatpush1.bf16.msra.mxu0 %v3579_v1  ;;  %2867 = vmatpush3.bf16.msra.mxu1 %v3582_v3 }
 0x19d   :  { %2840 = vmatprep.subr.bf16.mxu0 %v3585_v4  ;;  %2868 = vmatprep.subr.bf16.mxu1 %v3409_v35 }
 0x1a0   :  { %2842 = vmatpush1.bf16.msra.mxu0 %v3589_v10  ;;  %2870 = vmatpush3.bf16.msra.mxu1 %v3592_v12 }
 0x1a1   :  { %2844 = vmatprep.subr.bf16.mxu0 %v3595_v13  ;;  %2871 = vmatprep.subr.bf16.mxu1 %v3409_v35 }
 0x1a4   :  { %2846 = vmatpush1.bf16.msra.mxu0 %v3599_v19  ;;  %2873 = vmatpush3.bf16.msra.mxu1 %v3602_v21 }
 0x1a5   :  { %2848 = vmatprep.subr.bf16.mxu0 %v3605_v22  ;;  %2874 = vmatprep.subr.bf16.mxu1 %v3409_v35 }
 0x1a8   :  { %2850 = vmatpush1.bf16.msra.mxu0 %v3609_v28  ;;  %2876 = vmatpush3.bf16.msra.mxu1 %v3612_v30 }
 0x1a9   :  { %2852 = vmatprep.subr.bf16.mxu0 %v3615_v31  ;;  %2877 = vmatprep.subr.bf16.mxu1 %v3409_v35 }
 0x1ac   :  { %2854 = vmatpush1.bf16.msra.mxu0 %v3619_v39  ;;  %2879 = vmatpush3.bf16.msra.mxu1 %v3622_v41 }
 0x1ad   :  { %2856 = vmatprep.subr.bf16.mxu0 %v3625_v42  ;;  %2880 = vmatprep.subr.bf16.mxu1 %v3409_v35 }
 0x1b0   :  { %2858 = vmatpush1.bf16.msra.mxu0 %v3629_v48  ;;  %2882 = vmatpush3.bf16.msra.mxu1 %v3632_v50 }
 0x1b1   :  { %2884 = vmatprep.subr.bf16.mxu0 %v3546_v32  ;;  %2915 = vmatprep.subr.bf16.mxu1 %v3409_v35 }
 0x266   :  { %v733_v63 = vpop.f32.mrb[6].mxu0  ;;  %v804_v2 = vpop.f32.mrb[6].mxu1 }
 0x267   :  { %v808_v5 = vadd.f32 %v733_v63, %v618_v51  ;;  %v735_v6 = vpop.f32.mrb[7].mxu0  ;;  %v2504_v7 = vpop.f32.mrb[7].mxu1  ;;  %v825_v32 = vadd.f32 %v804_v2, %v3688_v38  ;;  %v1289_v51 = vld [vmem:[#allocation11 + $0x80] sm:$0xff] }
 0x268   :  { %v818_v11 = vadd.f32 %v816_v9, %v735_v6  ;;  %v1285_v2 = vld [vmem:[#allocation11 + $0x60] sm:$0xff]  ;;  %v1292_v7 = vld [vmem:[#allocation11 + $0x98] sm:$0xff] }
 0x269   :  { %v2240_v8 = vmul.f32 -1.442695, %v808_v5  ;;  %v1288_v5 = vld [vmem:[#allocation11 + $0x78] sm:$0xff] }
 0x26a   :  { %v2241_v14 = vmul.f32 -1.442695, %v818_v11  ;;  %v3803_v6 = vpack.c.bf16 %v1288_v5, %v1285_v2  ;;  %v1291_v11 = vld [vmem:[#allocation11 + $0x90] sm:$0xff] }
 0x26b   :  { %3220 = vpow2.f32 %v2240_v8  ;;  %v1295_v8 = vld [vmem:[#allocation11 + $0xb0] sm:$0xff] }
 0x26c   :  { %3222 = vpow2.f32 %v2241_v14  ;;  %v3807_v9 = vpack.c.bf16 %v1295_v8, %v1292_v7  ;;  %v1294_v14 = vld [vmem:[#allocation11 + $0xa8] sm:$0xff] }
 0x275   :  { %v3221_v15 = vpop.eup %3220 }
 0x276   :  { %v812_v16 = vadd.f32 1.0, %v3221_v15  ;;  %v3223_v17 = vpop.eup %3222  ;;  %v1293_v15 = vld [vmem:[#allocation11 + $0xa0] sm:$0xff] }
 0x277   :  { %v822_v25 = vadd.f32 1.0, %v3223_v17  ;;  %v1296_v17 = vld [vmem:[#allocation11 + $0xb8] sm:$0xff] }
 0x278   :  { %3224 = vrcp.f32 %v812_v16  ;;  %v3809_v16 = vpack.c.bf16 %v1294_v14, %v1291_v11 }
 0x282   :  { %v3225_v18 = vpop.eup %3224 }
 0x283   :  { %v826_v23 = vmul.f32 %v3225_v18, %v825_v32  ;;  %v3812_v32 = vpack.c.bf16 %v1296_v17, %v1293_v15  ;;  %v1298_v18 = vld [vmem:[#allocation11 + $0xc8] sm:$0xff] }
 0x285   :  { %v829_v24 = vadd.f32 %v827_v20, %v826_v23  ;;  %v1301_v20 = vld [vmem:[#allocation11 + $0xe0] sm:$0xff] }
 0x286   :  { %v1297_v23 = vld [vmem:[#allocation11 + $0xc0] sm:$0xff] }
 0x287   :  { %3226 = vtanh.f32 %v829_v24  ;;  %v3816_v24 = vpack.c.bf16 %v1301_v20, %v1298_v18 }
 0x288   :  { %3228 = vrcp.f32 %v822_v25  ;;  %v1300_v25 = vld [vmem:[#allocation11 + $0xd8] sm:$0xff] }
 0x291   :  { %v3227_v26 = vpop.eup %3226 }
 0x292   :  { %v831_v27 = vsub.f32 %v3692_v62, %v3227_v26  ;;  %v3229_v29 = vpop.eup %3228  ;;  %v1286_v62 = vld [vmem:[#allocation11 + $0x68] sm:$0xff] }
 0x293   :  { %v3801_v63 = vpack.c.bf16 %v1289_v51, %v1286_v62 }
 0x294   :  { %v832_v33 = vmul.f32 %v3229_v29, %v831_v27  ;;  %v1302_v27 = vld [vmem:[#allocation11 + $0xe8] sm:$0xff]  ;;  %v3819_v29 = vpack.c.bf16 %v1300_v25, %v1297_v23 }
 0x296   :  { %v3734_v34 = vadd.f32 %v3227_v26, %v832_v33  ;;  %v1299_v26 = vld [vmem:[#allocation11 + $0xd0] sm:$0xff] }
 0x297   :  { %v3821_v33 = vpack.c.bf16 %v1302_v27, %v1299_v26 }
 0x298   :  { %834 = vst [vmem:[#allocation12 + $0x1] sm:$0x1] %v3734_v34  ;;  %950 = vmatmul.mubr.f32.vlgmr.msra.gmra.mrb[8].mxu0 %v3734_v34  ;;  %2538 = vmatmul.mubr.f32.vlgmr.msra.gmra.mrb[8].mxu1 %v3734_v34 }
 0x299   :  { %2886 = vmatpush1.bf16.msra.mxu0 %v3559_v45  ;;  %2917 = vmatpush3.bf16.msra.mxu1 %v3561_v47  ;;  %v836_v45 = vld [vmem:[#allocation3 + $0x2] ss:$8 sm:$0x7] }
 0x29a   :  { %2888 = vmatprep.subr.bf16.mxu0 %v3563_v49  ;;  %2918 = vmatprep.subr.bf16.mxu1 %v3409_v35 }
 0x29b   :  { %1167 = vmatprep.mubr.f32.mxu0 %v3406_v0  ;;  %2572 = vmatprep.mubr.msk.f32.mxu1 %vm3408_vm0, %v3406_v0 }
 0x29d   :  { %2890 = vmatpush1.bf16.msra.mxu0 %v3566_v55  ;;  %2920 = vmatpush3.bf16.msra.mxu1 %v3569_v57 }
 0x29e   :  { %2892 = vmatprep.subr.bf16.mxu0 %v3572_v58  ;;  %2921 = vmatprep.subr.bf16.mxu1 %v3409_v35 }
 0x2a1   :  { %2894 = vmatpush1.bf16.msra.mxu0 %v3579_v1  ;;  %2923 = vmatpush3.bf16.msra.mxu1 %v3582_v3 }
 0x2a2   :  { %2896 = vmatprep.subr.bf16.mxu0 %v3585_v4  ;;  %2924 = vmatprep.subr.bf16.mxu1 %v3409_v35 }
 0x2a5   :  { %2898 = vmatpush1.bf16.msra.mxu0 %v3589_v10  ;;  %2926 = vmatpush3.bf16.msra.mxu1 %v3592_v12  ;;  %v1034_v12 = vrot.slane %v836_v45, 1 }
 0x2a6   :  { %2900 = vmatprep.subr.bf16.mxu0 %v3595_v13  ;;  %2927 = vmatprep.subr.bf16.mxu1 %v3409_v35 }
 0x2a9   :  { %2902 = vmatpush1.bf16.msra.mxu0 %v3599_v19  ;;  %2929 = vmatpush3.bf16.msra.mxu1 %v3602_v21 }
 0x2aa   :  { %2904 = vmatprep.subr.bf16.mxu0 %v3605_v22  ;;  %2930 = vmatprep.subr.bf16.mxu1 %v3409_v35 }
 0x2ad   :  { %2906 = vmatpush1.bf16.msra.mxu0 %v3609_v28  ;;  %2932 = vmatpush3.bf16.msra.mxu1 %v3612_v30 }
 0x2ae   :  { %2908 = vmatprep.subr.bf16.mxu0 %v3615_v31  ;;  %2933 = vmatprep.subr.bf16.mxu1 %v3409_v35 }
 0x2b1   :  { %2910 = vmatpush1.bf16.msra.mxu0 %v3619_v39  ;;  %2935 = vmatpush3.bf16.msra.mxu1 %v3622_v41  ;;  %v1045_v39 = vrot.slane %v836_v45, 2 }
 0x2b2   :  { %2912 = vmatprep.subr.bf16.mxu0 %v3625_v42  ;;  %2936 = vmatprep.subr.bf16.mxu1 %v3409_v35 }
 0x2b5   :  { %2914 = vmatpush1.bf16.msra.mxu0 %v3629_v48  ;;  %2938 = vmatpush3.bf16.msra.mxu1 %v3632_v50 }
 0x2b6   :  { %2971 = vmatprep.subr.bf16.mxu1 %v3409_v35  ;;  %2940 = vmatprep.subr.bf16.mxu0 %v3789_v52 }
 0x36b   :  { %v951_v49 = vpop.f32.mrb[8].mxu0  ;;  %v1022_v55 = vpop.f32.mrb[8].mxu1 }
 0x36c   :  { %v1026_v58 = vadd.f32 %v951_v49, %v836_v45  ;;  %v953_v1 = vpop.f32.mrb[9].mxu0  ;;  %v2539_v4 = vpop.f32.mrb[9].mxu1  ;;  %v1043_v30 = vadd.f32 %v1022_v55, %v3688_v38  ;;  %v1307_v45 = vld [vmem:[#allocation11 + $0x110] sm:$0xff] }
 0x36d   :  { %v1036_v13 = vadd.f32 %v1034_v12, %v953_v1  ;;  %v1303_v49 = vld [vmem:[#allocation11 + $0xf0] sm:$0xff]  ;;  %v1305_v1 = vld [vmem:[#allocation11 + $0x100] sm:$0xff]  ;;  %v1308_v4 = vld [vmem:[#allocation11 + $0x118] sm:$0xff] }
 0x36e   :  { %v2242_v10 = vmul.f32 -1.442695, %v1026_v58  ;;  %v1306_v58 = vld [vmem:[#allocation11 + $0x108] sm:$0xff] }
 0x36f   :  { %v2243_v19 = vmul.f32 -1.442695, %v1036_v13  ;;  %v1310_v12 = vld [vmem:[#allocation11 + $0x128] sm:$0xff]  ;;  %v1313_v13 = vld [vmem:[#allocation11 + $0x140] sm:$0xff] }
 0x370   :  { %3230 = vpow2.f32 %v2242_v10  ;;  %v3827_v10 = vpack.c.bf16 %v1306_v58, %v1303_v49  ;;  %v1496_v58 = vld [vmem:[#allocation11 + $0x28] sm:$0xff] }
 0x371   :  { %3232 = vpow2.f32 %v2243_v19  ;;  %v3831_v19 = vpack.c.bf16 %v1308_v4, %v1305_v1  ;;  %v1499_v4 = vld [vmem:[#allocation11 + $0x40] sm:$0xff] }
 0x37a   :  { %v3231_v21 = vpop.eup %3230 }
 0x37b   :  { %v1030_v22 = vadd.f32 1.0, %v3231_v21  ;;  %v3233_v28 = vpop.eup %3232  ;;  %v3833_v21 = vpack.c.bf16 %v1313_v13, %v1310_v12  ;;  %v1502_v12 = vld [vmem:[#allocation11 + $0x58] sm:$0xff] }
 0x37c   :  { %v1040_v48 = vadd.f32 1.0, %v3233_v28  ;;  %v1312_v28 = vld [vmem:[#allocation11 + $0x138] sm:$0xff]  ;;  %v3888_v13 = vpack.c.bf16 %v1502_v12, %v1499_v4 }
 0x37d   :  { %3234 = vrcp.f32 %v1030_v22  ;;  %v1309_v22 = vld [vmem:[#allocation11 + $0x120] sm:$0xff] }
 0x387   :  { %v3235_v31 = vpop.eup %3234 }
 0x388   :  { %v1044_v41 = vmul.f32 %v3235_v31, %v1043_v30  ;;  %v1311_v30 = vld [vmem:[#allocation11 + $0x130] sm:$0xff]  ;;  %v1314_v31 = vld [vmem:[#allocation11 + $0x148] sm:$0xff] }
 0x38a   :  { %v1047_v42 = vadd.f32 %v1045_v39, %v1044_v41  ;;  %v1316_v39 = vld [vmem:[#allocation11 + $0x158] sm:$0xff]  ;;  %v1319_v41 = vld [vmem:[#allocation11 + $0x170] sm:$0xff] }
 0x38c   :  { %3236 = vtanh.f32 %v1047_v42  ;;  %v3837_v42 = vpack.c.bf16 %v1312_v28, %v1309_v22  ;;  %v1505_v22 = vld [vmem:[#allocation11 + $0x70] sm:$0xff]  ;;  %v1508_v28 = vld [vmem:[#allocation11 + $0x88] sm:$0xff] }
 0x38d   :  { %3238 = vrcp.f32 %v1040_v48  ;;  %v3841_v48 = vpack.c.bf16 %v1314_v31, %v1311_v30  ;;  %v3892_v30 = vpack.c.bf16 %v1508_v28, %v1505_v22  ;;  %v1272_v31 = vld [vmem:[#allocation3 + $0x4] ss:$8 sm:$0x7] }
 0x396   :  { %v3237_v50 = vpop.eup %3236 }
 0x397   :  { %v1049_v36 = vsub.f32 %v3734_v34, %v3237_v50  ;;  %v3239_v37 = vpop.eup %3238  ;;  %v1304_v34 = vld [vmem:[#allocation11 + $0xf8] sm:$0xff] }
 0x398   :  { %v3824_v55 = vpack.c.bf16 %v1307_v45, %v1304_v34 }
 0x399   :  { %v1050_v40 = vmul.f32 %v3239_v37, %v1049_v36  ;;  %v1315_v36 = vld [vmem:[#allocation11 + $0x150] sm:$0xff]  ;;  %v1318_v37 = vld [vmem:[#allocation11 + $0x168] sm:$0xff] }
 0x39a   :  { %v3847_v46 = vpack.c.bf16 %v1318_v37, %v1315_v36 }
 0x39b   :  { %v3775_v43 = vadd.f32 %v3237_v50, %v1050_v40  ;;  %v3843_v50 = vpack.c.bf16 %v1319_v41, %v1316_v39  ;;  %v1317_v40 = vld [vmem:[#allocation11 + $0x160] sm:$0xff] }
 0x39d   :  { %1052 = vst [vmem:[#allocation12 + $0x2] sm:$0x1] %v3775_v43  ;;  %1168 = vmatmul.mubr.f32.vlgmr.msra.gmra.mrb[10].mxu0 %v3775_v43  ;;  %2573 = vmatmul.mubr.f32.vlgmr.msra.gmra.mrb[10].mxu1 %v3775_v43 }
 0x39e   :  { %2973 = vmatpush3.bf16.msra.mxu1 %v3561_v47  ;;  %1385 = vmatprep.mubr.f32.mxu0 %v3406_v0  ;;  %v1273_v47 = vld [vmem:[#allocation11] sm:$0xff] }
 0x39f   :  { %2974 = vmatprep.subr.bf16.mxu1 %v3409_v35  ;;  %2607 = vmatprep.mubr.msk.f32.mxu1 %vm3408_vm0, %v3406_v0  ;;  %v3791_v54 = vpack.c.bf16 %v1276_v53, %v1273_v47  ;;  %v3851_v47 = vpack.c.bf16 %v1320_v44, %v1317_v40  ;;  %v1054_v53 = vld [vmem:[#allocation3 + $0x3] ss:$8 sm:$0x7] }
 0x3a0   :  { %v1252_v2 = vrot.slane %v1054_v53, 1  ;;  %v1263_v18 = vrot.slane %v1054_v53, 2 }
 0x3a1   :  { %2942 = vmatpush1.bf16.msra.mxu0 %v3791_v54 }
 0x3a2   :  { %2976 = vmatpush3.bf16.msra.mxu1 %v3569_v57  ;;  %v1283_v57 = vld [vmem:[#allocation11 + $0x50] sm:$0xff] }
 0x3a3   :  { %2977 = vmatprep.subr.bf16.mxu1 %v3409_v35  ;;  %v3795_v59 = vpack.c.bf16 %v1283_v57, %v1280_v56 }
 0x3a5   :  { %2944 = vmatprep.subr.bf16.mxu0 %v3795_v59 }
 0x3a6   :  { %2979 = vmatpush3.bf16.msra.mxu1 %v3582_v3  ;;  %v1282_v3 = vld [vmem:[#allocation11 + $0x48] sm:$0xff] }
 0x3a7   :  { %2980 = vmatprep.subr.bf16.mxu1 %v3409_v35  ;;  %v3797_v61 = vpack.c.bf16 %v1282_v3, %v1279_v60 }
 0x3a9   :  { %2946 = vmatpush1.bf16.msra.mxu0 %v3797_v61 }
 0x3aa   :  { %2948 = vmatprep.subr.bf16.mxu0 %v3801_v63  ;;  %2982 = vmatpush3.bf16.msra.mxu1 %v3812_v32 }
 0x3ab   :  { %2983 = vmatprep.subr.bf16.mxu1 %v3409_v35 }
 0x3ad   :  { %2950 = vmatpush1.bf16.msra.mxu0 %v3803_v6 }
 0x3ae   :  { %2952 = vmatprep.subr.bf16.mxu0 %v3807_v9  ;;  %2985 = vmatpush3.bf16.msra.mxu1 %v3821_v33 }
 0x3af   :  { %2986 = vmatprep.subr.bf16.mxu1 %v3409_v35 }
 0x3b1   :  { %2954 = vmatpush1.bf16.msra.mxu0 %v3809_v16 }
 0x3b2   :  { %2956 = vmatprep.subr.bf16.mxu0 %v3816_v24  ;;  %2988 = vmatpush3.bf16.msra.mxu1 %v3831_v19 }
 0x3b3   :  { %2989 = vmatprep.subr.bf16.mxu1 %v3409_v35 }
 0x3b5   :  { %2958 = vmatpush1.bf16.msra.mxu0 %v3819_v29 }
 0x3b6   :  { %2960 = vmatprep.subr.bf16.mxu0 %v3824_v55  ;;  %2991 = vmatpush3.bf16.msra.mxu1 %v3841_v48 }
 0x3b7   :  { %2992 = vmatprep.subr.bf16.mxu1 %v3409_v35 }
 0x3b9   :  { %2962 = vmatpush1.bf16.msra.mxu0 %v3827_v10 }
 0x3ba   :  { %2964 = vmatprep.subr.bf16.mxu0 %v3833_v21  ;;  %2994 = vmatpush3.bf16.msra.mxu1 %v3851_v47 }
 0x3bb   :  { %3027 = vmatprep.subr.bf16.mxu1 %v3409_v35 }
 0x3bd   :  { %2966 = vmatpush1.bf16.msra.mxu0 %v3837_v42 }
 0x3be   :  { %2968 = vmatprep.subr.bf16.mxu0 %v3843_v50 }
 0x3c1   :  { %2970 = vmatpush1.bf16.msra.mxu0 %v3847_v46 }
 0x3c2   :  { %2996 = vmatprep.subr.bf16.mxu0 %v3789_v52 }
 0x470   :  { %v1169_v56 = vpop.f32.mrb[10].mxu0  ;;  %v1240_v57 = vpop.f32.mrb[10].mxu1 }
 0x471   :  { %v1244_v60 = vadd.f32 %v1169_v56, %v1054_v53  ;;  %v1171_v3 = vpop.f32.mrb[11].mxu0  ;;  %v2574_v62 = vpop.f32.mrb[11].mxu1  ;;  %v1261_v15 = vadd.f32 %v1240_v57, %v3688_v38  ;;  %v1470_v53 = vrot.slane %v1272_v31, 1 }
 0x472   :  { %v1254_v5 = vadd.f32 %v1252_v2, %v1171_v3 }
 0x473   :  { %v2244_v51 = vmul.f32 -1.442695, %v1244_v60 }
 0x474   :  { %v2245_v7 = vmul.f32 -1.442695, %v1254_v5  ;;  %v1481_v5 = vrot.slane %v1272_v31, 2 }
 0x475   :  { %3240 = vpow2.f32 %v2244_v51 }
 0x476   :  { %3242 = vpow2.f32 %v2245_v7 }
 0x47f   :  { %v3241_v8 = vpop.eup %3240 }
 0x480   :  { %v1248_v11 = vadd.f32 1.0, %v3241_v8  ;;  %v3243_v14 = vpop.eup %3242 }
 0x481   :  { %v1258_v25 = vadd.f32 1.0, %v3243_v14 }
 0x482   :  { %3244 = vrcp.f32 %v1248_v11 }
 0x48c   :  { %v3245_v17 = vpop.eup %3244 }
 0x48d   :  { %v1262_v20 = vmul.f32 %v3245_v17, %v1261_v15 }
 0x48f   :  { %v1265_v23 = vadd.f32 %v1263_v18, %v1262_v20 }
 0x491   :  { %3246 = vtanh.f32 %v1265_v23  ;;  %v1490_v23 = vld [vmem:[#allocation3 + $0x5] ss:$8 sm:$0x7] }
 0x492   :  { %3248 = vrcp.f32 %v1258_v25 }
 0x49b   :  { %v3247_v26 = vpop.eup %3246 }
 0x49c   :  { %v1267_v27 = vsub.f32 %v3775_v43, %v3247_v26  ;;  %v3249_v34 = vpop.eup %3248  ;;  %v1493_v43 = vld [vmem:[#allocation11 + $0x10] sm:$0xff] }
 0x49d   :  { %v3884_v1 = vpack.c.bf16 %v1496_v58, %v1493_v43  ;;  %v1688_v43 = vrot.slane %v1490_v23, 1 }
 0x49e   :  { %v1268_v45 = vmul.f32 %v3249_v34, %v1267_v27 }
 0x4a0   :  { %v3860_v49 = vadd.f32 %v3247_v26, %v1268_v45 }
 0x4a2   :  { %1270 = vst [vmem:[#allocation12 + $0x3] sm:$0x1] %v3860_v49  ;;  %1386 = vmatmul.mubr.f32.vlgmr.msra.gmra.mrb[12].mxu0 %v3860_v49  ;;  %2608 = vmatmul.mubr.f32.vlgmr.msra.gmra.mrb[12].mxu1 %v3860_v49 }
 0x4a3   :  { %2998 = vmatpush1.bf16.msra.mxu0 %v3791_v54  ;;  %1603 = vmatprep.mubr.f32.mxu0 %v3406_v0 }
 0x4a4   :  { %3000 = vmatprep.subr.bf16.mxu0 %v3795_v59  ;;  %2642 = vmatprep.mubr.msk.f32.mxu1 %vm3408_vm0, %v3406_v0 }
 0x4a5   :  { %3029 = vmatpush3.bf16.msra.mxu1 %v3884_v1 }
 0x4a6   :  { %3030 = vmatprep.subr.bf16.mxu1 %v3409_v35 }
 0x4a7   :  { %3002 = vmatpush1.bf16.msra.mxu0 %v3797_v61 }
 0x4a8   :  { %3004 = vmatprep.subr.bf16.mxu0 %v3801_v63 }
 0x4a9   :  { %3032 = vmatpush3.bf16.msra.mxu1 %v3888_v13 }
 0x4aa   :  { %3033 = vmatprep.subr.bf16.mxu1 %v3409_v35 }
 0x4ab   :  { %3006 = vmatpush1.bf16.msra.mxu0 %v3803_v6 }
 0x4ac   :  { %3008 = vmatprep.subr.bf16.mxu0 %v3807_v9 }
 0x4ad   :  { %3035 = vmatpush3.bf16.msra.mxu1 %v3892_v30 }
 0x4ae   :  { %3036 = vmatprep.subr.bf16.mxu1 %v3409_v35 }
 0x4af   :  { %3010 = vmatpush1.bf16.msra.mxu0 %v3809_v16 }
 0x4b0   :  { %3012 = vmatprep.subr.bf16.mxu0 %v3816_v24 }
 0x4b1   :  { %3038 = vmatpush3.bf16.msra.mxu1 %v3812_v32 }
 0x4b2   :  { %3039 = vmatprep.subr.bf16.mxu1 %v3409_v35 }
 0x4b3   :  { %3014 = vmatpush1.bf16.msra.mxu0 %v3819_v29 }
 0x4b4   :  { %3016 = vmatprep.subr.bf16.mxu0 %v3824_v55 }
 0x4b5   :  { %3041 = vmatpush3.bf16.msra.mxu1 %v3821_v33 }
 0x4b6   :  { %3042 = vmatprep.subr.bf16.mxu1 %v3409_v35 }
 0x4b7   :  { %3018 = vmatpush1.bf16.msra.mxu0 %v3827_v10 }
 0x4b8   :  { %3020 = vmatprep.subr.bf16.mxu0 %v3833_v21 }
 0x4b9   :  { %3044 = vmatpush3.bf16.msra.mxu1 %v3831_v19 }
 0x4ba   :  { %3045 = vmatprep.subr.bf16.mxu1 %v3409_v35 }
 0x4bb   :  { %3022 = vmatpush1.bf16.msra.mxu0 %v3837_v42 }
 0x4bc   :  { %3024 = vmatprep.subr.bf16.mxu0 %v3843_v50 }
 0x4bd   :  { %3047 = vmatpush3.bf16.msra.mxu1 %v3841_v48 }
 0x4be   :  { %3048 = vmatprep.subr.bf16.mxu1 %v3409_v35 }
 0x4bf   :  { %3026 = vmatpush1.bf16.msra.mxu0 %v3847_v46 }
 0x4c0   :  { %3052 = vmatprep.subr.bf16.mxu0 %v3789_v52 }
 0x4c1   :  { %3050 = vmatpush3.bf16.msra.mxu1 %v3851_v47 }
 0x4c2   :  { %3083 = vmatprep.subr.bf16.mxu1 %v3409_v35 }
 0x575   :  { %v1387_v39 = vpop.f32.mrb[12].mxu0  ;;  %v1458_v41 = vpop.f32.mrb[12].mxu1 }
 0x576   :  { %v1462_v36 = vadd.f32 %v1387_v39, %v1272_v31  ;;  %v1389_v37 = vpop.f32.mrb[13].mxu0  ;;  %v2609_v40 = vpop.f32.mrb[13].mxu1  ;;  %v1479_v51 = vadd.f32 %v1458_v41, %v3688_v38  ;;  %v1699_v39 = vrot.slane %v1490_v23, 2 }
 0x577   :  { %v1472_v56 = vadd.f32 %v1470_v53, %v1389_v37 }
 0x578   :  { %v2246_v44 = vmul.f32 -1.442695, %v1462_v36 }
 0x579   :  { %v2247_v57 = vmul.f32 -1.442695, %v1472_v56 }
 0x57a   :  { %3250 = vpow2.f32 %v2246_v44 }
 0x57b   :  { %3252 = vpow2.f32 %v2247_v57 }
 0x584   :  { %v3251_v60 = vpop.eup %3250 }
 0x585   :  { %v1466_v3 = vadd.f32 1.0, %v3251_v60  ;;  %v3253_v62 = vpop.eup %3252 }
 0x586   :  { %v1476_v11 = vadd.f32 1.0, %v3253_v62 }
 0x587   :  { %3254 = vrcp.f32 %v1466_v3 }
 0x591   :  { %v3255_v2 = vpop.eup %3254 }
 0x592   :  { %v1480_v7 = vmul.f32 %v3255_v2, %v1479_v51 }
 0x594   :  { %v1483_v8 = vadd.f32 %v1481_v5, %v1480_v7 }
 0x596   :  { %3256 = vtanh.f32 %v1483_v8 }
 0x597   :  { %3258 = vrcp.f32 %v1476_v11 }
 0x5a0   :  { %v3257_v14 = vpop.eup %3256 }
 0x5a1   :  { %v1485_v15 = vsub.f32 %v3860_v49, %v3257_v14  ;;  %v3259_v17 = vpop.eup %3258 }
 0x5a3   :  { %v1486_v18 = vmul.f32 %v3259_v17, %v1485_v15 }
 0x5a5   :  { %v3908_v20 = vadd.f32 %v3257_v14, %v1486_v18 }
 0x5a7   :  { %1488 = vst [vmem:[#allocation12 + $0x4] sm:$0x1] %v3908_v20  ;;  %1604 = vmatmul.mubr.f32.vlgmr.msra.gmra.mrb[14].mxu0 %v3908_v20  ;;  %2643 = vmatmul.mubr.f32.vlgmr.msra.gmra.mrb[14].mxu1 %v3908_v20 }
 0x5a8   :  { %3054 = vmatpush1.bf16.msra.mxu0 %v3791_v54  ;;  %3085 = vmatpush3.bf16.msra.mxu1 %v3884_v1 }
 0x5a9   :  { %3056 = vmatprep.subr.bf16.mxu0 %v3795_v59  ;;  %3086 = vmatprep.subr.bf16.mxu1 %v3409_v35 }
 0x5aa   :  { %1821 = vmatprep.mubr.f32.mxu0 %v3406_v0  ;;  %2677 = vmatprep.mubr.msk.f32.mxu1 %vm3408_vm0, %v3406_v0 }
 0x5ac   :  { %3058 = vmatpush1.bf16.msra.mxu0 %v3797_v61  ;;  %3088 = vmatpush3.bf16.msra.mxu1 %v3888_v13 }
 0x5ad   :  { %3060 = vmatprep.subr.bf16.mxu0 %v3801_v63  ;;  %3089 = vmatprep.subr.bf16.mxu1 %v3409_v35 }
 0x5b0   :  { %3062 = vmatpush1.bf16.msra.mxu0 %v3803_v6  ;;  %3091 = vmatpush3.bf16.msra.mxu1 %v3892_v30 }
 0x5b1   :  { %3064 = vmatprep.subr.bf16.mxu0 %v3807_v9  ;;  %3092 = vmatprep.subr.bf16.mxu1 %v3409_v35 }
 0x5b4   :  { %3066 = vmatpush1.bf16.msra.mxu0 %v3809_v16  ;;  %3094 = vmatpush3.bf16.msra.mxu1 %v3812_v32 }
 0x5b5   :  { %3068 = vmatprep.subr.bf16.mxu0 %v3816_v24  ;;  %3095 = vmatprep.subr.bf16.mxu1 %v3409_v35 }
 0x5b8   :  { %3070 = vmatpush1.bf16.msra.mxu0 %v3819_v29  ;;  %3097 = vmatpush3.bf16.msra.mxu1 %v3821_v33 }
 0x5b9   :  { %3072 = vmatprep.subr.bf16.mxu0 %v3824_v55  ;;  %3098 = vmatprep.subr.bf16.mxu1 %v3409_v35 }
 0x5bc   :  { %3074 = vmatpush1.bf16.msra.mxu0 %v3827_v10  ;;  %3100 = vmatpush3.bf16.msra.mxu1 %v3831_v19 }
 0x5bd   :  { %3076 = vmatprep.subr.bf16.mxu0 %v3833_v21  ;;  %3101 = vmatprep.subr.bf16.mxu1 %v3409_v35 }
 0x5c0   :  { %3078 = vmatpush1.bf16.msra.mxu0 %v3837_v42  ;;  %3103 = vmatpush3.bf16.msra.mxu1 %v3841_v48 }
 0x5c1   :  { %3080 = vmatprep.subr.bf16.mxu0 %v3843_v50  ;;  %3104 = vmatprep.subr.bf16.mxu1 %v3409_v35 }
 0x5c4   :  { %3082 = vmatpush1.bf16.msra.mxu0 %v3847_v46  ;;  %3106 = vmatpush3.bf16.msra.mxu1 %v3851_v47 }
 0x5c5   :  { %3108 = vmatprep.subr.bf16.mxu0 %v3789_v52  ;;  %3139 = vmatprep.subr.bf16.mxu1 %v3409_v35 }
 0x67a   :  { %v1605_v25 = vpop.f32.mrb[14].mxu0  ;;  %v1676_v26 = vpop.f32.mrb[14].mxu1 }
 0x67b   :  { %v1680_v27 = vadd.f32 %v1605_v25, %v1490_v23  ;;  %v1607_v34 = vpop.f32.mrb[15].mxu0  ;;  %v2644_v45 = vpop.f32.mrb[15].mxu1  ;;  %v1697_v52 = vadd.f32 %v1676_v26, %v3688_v38 }
 0x67c   :  { %v1690_v58 = vadd.f32 %v1688_v43, %v1607_v34 }
 0x67d   :  { %v2248_v49 = vmul.f32 -1.442695, %v1680_v27 }
 0x67e   :  { %v2249_v4 = vmul.f32 -1.442695, %v1690_v58 }
 0x67f   :  { %3260 = vpow2.f32 %v2248_v49 }
 0x680   :  { %3262 = vpow2.f32 %v2249_v4 }
 0x689   :  { %v3261_v12 = vpop.eup %3260 }
 0x68a   :  { %v1684_v22 = vadd.f32 1.0, %v3261_v12  ;;  %v3263_v28 = vpop.eup %3262 }
 0x68b   :  { %v1694_v37 = vadd.f32 1.0, %v3263_v28 }
 0x68c   :  { %3264 = vrcp.f32 %v1684_v22 }
 0x696   :  { %v3265_v31 = vpop.eup %3264 }
 0x697   :  { %v1698_v41 = vmul.f32 %v3265_v31, %v1697_v52 }
 0x699   :  { %v1701_v36 = vadd.f32 %v1699_v39, %v1698_v41 }
 0x69b   :  { %3266 = vtanh.f32 %v1701_v36 }
 0x69c   :  { %3268 = vrcp.f32 %v1694_v37 }
 0x6a5   :  { %v3267_v40 = vpop.eup %3266 }
 0x6a6   :  { %v1703_v44 = vsub.f32 %v3908_v20, %v3267_v40  ;;  %v3269_v53 = vpop.eup %3268 }
 0x6a8   :  { %v1704_v56 = vmul.f32 %v3269_v53, %v1703_v44 }
 0x6aa   :  { %v3950_v57 = vadd.f32 %v3267_v40, %v1704_v56 }
 0x6ac   :  { %1706 = vst [vmem:[#allocation12 + $0x5] sm:$0x1] %v3950_v57  ;;  %1822 = vmatmul.mubr.f32.vlgmr.msra.gmra.mrb[16].mxu0 %v3950_v57  ;;  %2678 = vmatmul.mubr.f32.vlgmr.msra.gmra.mrb[16].mxu1 %v3950_v57 }
 0x6ad   :  { %3110 = vmatpush1.bf16.msra.mxu0 %v3791_v54  ;;  %3141 = vmatpush3.bf16.msra.mxu1 %v3884_v1 }
 0x6ae   :  { %3112 = vmatprep.subr.bf16.mxu0 %v3795_v59  ;;  %3142 = vmatprep.subr.bf16.mxu1 %v3409_v35 }
 0x6af   :  { %2039 = vmatprep.mubr.f32.mxu0 %v3406_v0  ;;  %2712 = vmatprep.mubr.msk.f32.mxu1 %vm3408_vm0, %v3406_v0  ;;  %v1708_v0 = vld [vmem:[#allocation3 + $0x6] ss:$8 sm:$0x7] }
 0x6b1   :  { %3114 = vmatpush1.bf16.msra.mxu0 %v3797_v61  ;;  %3144 = vmatpush3.bf16.msra.mxu1 %v3888_v13 }
 0x6b2   :  { %3116 = vmatprep.subr.bf16.mxu0 %v3801_v63  ;;  %3145 = vmatprep.subr.bf16.mxu1 %v3409_v35 }
 0x6b5   :  { %3118 = vmatpush1.bf16.msra.mxu0 %v3803_v6  ;;  %3147 = vmatpush3.bf16.msra.mxu1 %v3892_v30  ;;  %v1926_v30 = vld [vmem:[#allocation3 + $0x7] ss:$8 sm:$0x7] }
 0x6b6   :  { %3120 = vmatprep.subr.bf16.mxu0 %v3807_v9  ;;  %3148 = vmatprep.subr.bf16.mxu1 %v3409_v35  ;;  %v2124_v7 = vrot.slane %v1926_v30, 1  ;;  %v2135_v23 = vrot.slane %v1926_v30, 2 }
 0x6b9   :  { %3122 = vmatpush1.bf16.msra.mxu0 %v3809_v16  ;;  %3150 = vmatpush3.bf16.msra.mxu1 %v3812_v32  ;;  %v1906_v16 = vrot.slane %v1708_v0, 1 }
 0x6ba   :  { %3124 = vmatprep.subr.bf16.mxu0 %v3816_v24  ;;  %3151 = vmatprep.subr.bf16.mxu1 %v3409_v35 }
 0x6bd   :  { %3126 = vmatpush1.bf16.msra.mxu0 %v3819_v29  ;;  %3153 = vmatpush3.bf16.msra.mxu1 %v3821_v33 }
 0x6be   :  { %3128 = vmatprep.subr.bf16.mxu0 %v3824_v55  ;;  %3154 = vmatprep.subr.bf16.mxu1 %v3409_v35 }
 0x6c1   :  { %3130 = vmatpush1.bf16.msra.mxu0 %v3827_v10  ;;  %3156 = vmatpush3.bf16.msra.mxu1 %v3831_v19  ;;  %v1917_v19 = vrot.slane %v1708_v0, 2 }
 0x6c2   :  { %3132 = vmatprep.subr.bf16.mxu0 %v3833_v21  ;;  %3157 = vmatprep.subr.bf16.mxu1 %v3409_v35 }
 0x6c5   :  { %3134 = vmatpush1.bf16.msra.mxu0 %v3837_v42  ;;  %3159 = vmatpush3.bf16.msra.mxu1 %v3841_v48 }
 0x6c6   :  { %3136 = vmatprep.subr.bf16.mxu0 %v3843_v50  ;;  %3160 = vmatprep.subr.bf16.mxu1 %v3409_v35 }
 0x6c9   :  { %3138 = vmatpush1.bf16.msra.mxu0 %v3847_v46  ;;  %3162 = vmatpush3.bf16.msra.mxu1 %v3851_v47 }
 0x77f   :  { %v1823_v54 = vpop.f32.mrb[16].mxu0  ;;  %v1894_v59 = vpop.f32.mrb[16].mxu1 }
 0x780   :  { %v1898_v61 = vadd.f32 %v1823_v54, %v1708_v0  ;;  %v1825_v63 = vpop.f32.mrb[17].mxu0  ;;  %v2679_v6 = vpop.f32.mrb[17].mxu1  ;;  %v1915_v55 = vadd.f32 %v1894_v59, %v3688_v38 }
 0x781   :  { %v1908_v32 = vadd.f32 %v1906_v16, %v1825_v63 }
 0x782   :  { %v2250_v9 = vmul.f32 -1.442695, %v1898_v61 }
 0x783   :  { %v2251_v24 = vmul.f32 -1.442695, %v1908_v32 }
 0x784   :  { %3270 = vpow2.f32 %v2250_v9 }
 0x785   :  { %3272 = vpow2.f32 %v2251_v24 }
 0x78e   :  { %v3271_v29 = vpop.eup %3270 }
 0x78f   :  { %v1902_v33 = vadd.f32 1.0, %v3271_v29  ;;  %v3273_v35 = vpop.eup %3272 }
 0x790   :  { %v1912_v48 = vadd.f32 1.0, %v3273_v35 }
 0x791   :  { %3274 = vrcp.f32 %v1902_v33 }
 0x79b   :  { %v3275_v10 = vpop.eup %3274 }
 0x79c   :  { %v1916_v21 = vmul.f32 %v3275_v10, %v1915_v55 }
 0x79e   :  { %v1919_v42 = vadd.f32 %v1917_v19, %v1916_v21 }
 0x7a0   :  { %3276 = vtanh.f32 %v1919_v42 }
 0x7a1   :  { %3278 = vrcp.f32 %v1912_v48 }
 0x7aa   :  { %v3277_v50 = vpop.eup %3276 }
 0x7ab   :  { %v1921_v46 = vsub.f32 %v3950_v57, %v3277_v50  ;;  %v3279_v47 = vpop.eup %3278 }
 0x7ad   :  { %v1922_v1 = vmul.f32 %v3279_v47, %v1921_v46 }
 0x7af   :  { %v1923_v13 = vadd.f32 %v3277_v50, %v1922_v1 }
 0x7b1   :  { %1924 = vst [vmem:[#allocation12 + $0x6] sm:$0x1] %v1923_v13  ;;  %2040 = vmatmul.mubr.f32.vlgmr.msra.gmra.mrb[18].mxu0 %v1923_v13  ;;  %2713 = vmatmul.mubr.f32.vlgmr.msra.gmra.mrb[18].mxu1 %v1923_v13 }
 0x884   :  { %v2041_v60 = vpop.f32.mrb[18].mxu0  ;;  %v2112_v3 = vpop.f32.mrb[18].mxu1 }
 0x885   :  { %v2116_v62 = vadd.f32 %v2041_v60, %v1926_v30  ;;  %v2043_v51 = vpop.f32.mrb[19].mxu0  ;;  %v2714_v2 = vpop.f32.mrb[19].mxu1  ;;  %v2133_v18 = vadd.f32 %v2112_v3, %v3688_v38 }
 0x886   :  { %v2126_v8 = vadd.f32 %v2124_v7, %v2043_v51 }
 0x887   :  { %v2252_v5 = vmul.f32 -1.442695, %v2116_v62 }
 0x888   :  { %v2253_v11 = vmul.f32 -1.442695, %v2126_v8 }
 0x889   :  { %3280 = vpow2.f32 %v2252_v5 }
 0x88a   :  { %3282 = vpow2.f32 %v2253_v11 }
 0x893   :  { %v3281_v14 = vpop.eup %3280 }
 0x894   :  { %v2120_v15 = vadd.f32 1.0, %v3281_v14  ;;  %v3283_v17 = vpop.eup %3282 }
 0x895   :  { %v2130_v27 = vadd.f32 1.0, %v3283_v17 }
 0x896   :  { %3284 = vrcp.f32 %v2120_v15 }
 0x8a0   :  { %v3285_v20 = vpop.eup %3284 }
 0x8a1   :  { %v2134_v25 = vmul.f32 %v3285_v20, %v2133_v18 }
 0x8a3   :  { %v2137_v26 = vadd.f32 %v2135_v23, %v2134_v25 }
 0x8a5   :  { %3286 = vtanh.f32 %v2137_v26 }
 0x8a6   :  { %3288 = vrcp.f32 %v2130_v27 }
 0x8af   :  { %v3287_v34 = vpop.eup %3286 }
 0x8b0   :  { %v2139_v45 = vsub.f32 %v1923_v13, %v3287_v34  ;;  %v3289_v49 = vpop.eup %3288 }
 0x8b2   :  { %v2140_v43 = vmul.f32 %v3289_v49, %v2139_v45 }
 0x8b4   :  { %v2141_v58 = vadd.f32 %v3287_v34, %v2140_v43 }
 0x8b6   :  { %2142 = vst [vmem:[#allocation12 + $0x7] sm:$0x1] %v2141_v58 }
 0x8b7   :  { %3377 = shalt.err (!%p3374_p5)
}
 0x8b8   :  { %s3378_s28 = scalar_lea.hbm %s4010_s7, 128 }
 0x8b9   :  { %p3379_p6 = scmp.ne.s32.totalorder %s4010_s7, %s3378_s28  ;;  %p3382_p7 = scmp.lt.u32.totalorder %s3378_s28, %s4010_s7 }
 0x8bb   :  { %p3384_p8 = pnand %p3382_p7, %p3379_p6 }
 0x8bd   :  { %3387 = shalt.err (!%p3384_p8)
}
 0x8be   :  { %2152 = dma.vmem_to_hbm [thread:$0]  %s2150_s25, 128, %s4010_s7, [#allocation8]  }
 0x8bf   :  { %3394 = dma.done.wait [#allocation8], 128  }
 0x8c0   :  { %3395 = vsyncadd [#allocation8], 4294967168 }
 0x8c1   :  { %2156 = vsyncpa [#allocation7], 1 }
 0x8c2   :  { %2157 = vsyncpa [#allocation10], 1 }
 0x8c3   :  { %2158 = vsyncpa [#allocation8], 1 }

</bundles_post_ra>
